<compile_context>
chip_gen: v7x
topology: tpu7x:2x2x1
jax: 0.10.0
libtpu: 0.0.40
codegen_flags: <defaults>
</compile_context>

<pallas_src>
import functools

import jax
import jax.numpy as jnp
from jax import lax
from jax.experimental import pallas as pl
from jax.experimental.pallas import tpu as pltpu


# ----------------------------------------------------------------------------
# Kernel
# ----------------------------------------------------------------------------
def _aggregator_kernel(vis_ref, emb_ref, w1_ref, b1_ref, w2_ref, b2_ref,
                       w3a_ref, w3b_ref, b3_ref, out_ref, *, nv_actual):
    Bt, Nv_p, Dobj = vis_ref.shape
    _, Ns_p, Dsem = emb_ref.shape
    E_p = w1_ref.shape[1]

    # bf16 inputs feed the MXU as bf16 (f32 accumulation); f32 stays f32.
    mxu_dt = jnp.bfloat16 if vis_ref.dtype == jnp.bfloat16 else jnp.float32

    # Fold batch into the matmul M dimension for the Linear layers.
    vis2d = vis_ref[...].reshape(Bt * Nv_p, Dobj)
    emb2d = emb_ref[...].reshape(Bt * Ns_p, Dsem)

    # im_embed_is:  vis_proj = relu(vis @ W1 + b1)            -> (Bt*Nv_p, E_p)
    vis_proj = jnp.maximum(
        jnp.dot(vis2d, w1_ref[...], preferred_element_type=jnp.float32)
        + b1_ref[...], 0.0)
    # sem_embed_is: emb_proj = relu(emb @ W2 + b2)            -> (Bt*Ns_p, E_p)
    emb_proj = jnp.maximum(
        jnp.dot(emb2d, w2_ref[...], preferred_element_type=jnp.float32)
        + b2_ref[...], 0.0)

    vis_b = vis_proj.astype(mxu_dt).reshape(Bt, Nv_p, E_p)
    emb_b = emb_proj.astype(mxu_dt).reshape(Bt, Ns_p, E_p)

    # similarity = emb_proj @ vis_proj^T (batched, contract last dims)
    sim = lax.dot_general(
        emb_b, vis_b,
        dimension_numbers=(((2,), (2,)), ((0,), (0,))),
        preferred_element_type=jnp.float32)                   # (Bt, Ns_p, Nv_p)

    # Mask the padded visual-node columns so they receive zero attention.
    if nv_actual != Nv_p:
        col = lax.broadcasted_iota(jnp.int32, sim.shape, 2)
        sim = jnp.where(col < nv_actual, sim, jnp.float32(-1e30))

    # softmax over visual nodes (EUP reciprocal for the normalizer)
    sim_max = jnp.max(sim, axis=-1, keepdims=True)
    p = jnp.exp(sim - sim_max)
    att = p * pl.reciprocal(jnp.sum(p, axis=-1, keepdims=True), approx=True)

    # attended visual features                                -> (Bt, Ns_p, E_p)
    i_att = lax.dot_general(
        att.astype(mxu_dt), vis_b,
        dimension_numbers=(((2,), (1,)), ((0,), (0,))),
        preferred_element_type=jnp.float32)

    # im_sem_combined: relu([emb_proj, i_att] @ W3 + b3) via split W3
    emb_proj_m = emb_proj.astype(mxu_dt)
    i_att2d = i_att.reshape(Bt * Ns_p, E_p).astype(mxu_dt)
    comb = (jnp.dot(emb_proj_m, w3a_ref[...], preferred_element_type=jnp.float32)
            + jnp.dot(i_att2d, w3b_ref[...], preferred_element_type=jnp.float32)
            + b3_ref[...])
    comb = jnp.maximum(comb, 0.0)

    # residual add
    out = comb + emb2d.astype(jnp.float32)
    out_ref[...] = out.reshape(Bt, Ns_p, Dsem).astype(out_ref.dtype)


# ----------------------------------------------------------------------------
# Helpers
# ----------------------------------------------------------------------------
def _round_up(n, m):
    return ((n + m - 1) // m) * m


def _pad_to(x, axis, target):
    pad = target - x.shape[axis]
    if pad == 0:
        return x
    widths = [(0, 0)] * x.ndim
    widths[axis] = (0, pad)
    return jnp.pad(x, widths)


def _vmem_capacity_bytes():
    try:
        return int(pltpu.get_tpu_info().vmem_capacity_bytes)
    except Exception:
        return 64 * 1024 * 1024   # conservative: v7x per-core VMEM


def _tile_vmem_bytes(bt, nv_p, ns_p, dobj, dsem, e_p, act_bytes):
    """Rough per-grid-step VMEM need: double-buffered I/O blocks + f32 temps."""
    io_blocks = 2 * act_bytes * (bt * nv_p * dobj + 2 * bt * ns_p * dsem)
    inter = 4 * (bt * nv_p * e_p            # vis_proj
                 + 2 * bt * ns_p * e_p      # emb_proj, i_att
                 + 3 * bt * ns_p * nv_p     # sim, exp, att
                 + 2 * bt * ns_p * dsem)    # comb, out
    return io_blocks + inter


def _pick_batch_tile(B, ns_p, tile_bytes_fn, budget):
    divisors = [d for d in range(1, B + 1) if B % d == 0]
    feasible = [d for d in divisors if tile_bytes_fn(d) <= budget] or [1]
    # Prefer >= 2 grid steps so "parallel" can shard across TensorCores.
    cand = [d for d in feasible if B // d >= 2] or feasible
    # Prefer folded-M (Bt*Ns) aligned to 256 (v6e/v7x MXU), then 128 (v5e).
    for mult in (256, 128):
        aligned = [d for d in cand if (d * ns_p) % mult == 0]
        if aligned:
            return max(aligned)
    return max(cand)


# ----------------------------------------------------------------------------
# Wrapper
# ----------------------------------------------------------------------------
def semantic_graph_aggregator(vis, emb, params):
    """vis: (B, Nv, obj_dim), emb: (B, Ns, sem_dim) -> (B, Ns, sem_dim)."""
    B, Nv, Dobj = vis.shape
    _, Ns, Dsem = emb.shape
    w1, b1, w2, b2, w3a, w3b, b3 = params      # embed dim pre-padded at init
    E_p = w1.shape[1]

    # Visual-node axis -> multiple of 128 (lane/MXU-dense attention path; the
    # padded columns are masked pre-softmax in the kernel). Semantic-node axis
    # -> multiple of 8 so in-kernel reshapes are pure relabels.
    Nv_p = _round_up(Nv, 128)
    Ns_p = _round_up(Ns, 8)
    vis_p = _pad_to(vis, 1, Nv_p)
    emb_p = _pad_to(emb, 1, Ns_p)

    act_bytes = vis.dtype.itemsize
    weight_bytes = sum(int(w.size) * w.dtype.itemsize for w in params)
    cap = _vmem_capacity_bytes()
    budget = max(int(0.75 * cap) - 2 * weight_bytes, 1 << 20)

    def tile_fn(bt):
        return _tile_vmem_bytes(bt, Nv_p, Ns_p, Dobj, Dsem, E_p, act_bytes)

    Bt = _pick_batch_tile(B, Ns_p, tile_fn, budget)
    grid = (B // Bt,)

    vmem_limit = int(min(int(0.9 * cap),
                         max(32 << 20,
                             2 * weight_bytes + 2 * tile_fn(Bt) + (4 << 20))))

    kernel = functools.partial(_aggregator_kernel, nv_actual=Nv)

    def run(single_buffer_weights):
        def rep(shape):
            nd = len(shape)
            kw = {}
            if single_buffer_weights:
                # Constant index_map -> double-buffering buys nothing; halve VMEM.
                kw["pipeline_mode"] = pl.Buffered(1)
            return pl.BlockSpec(shape, lambda b, _nd=nd: (0,) * _nd, **kw)

        return pl.pallas_call(
            kernel,
            out_shape=jax.ShapeDtypeStruct((B, Ns_p, Dsem), emb.dtype),
            grid=grid,
            in_specs=[
                pl.BlockSpec((Bt, Nv_p, Dobj), lambda b: (b, 0, 0)),   # vis
                pl.BlockSpec((Bt, Ns_p, Dsem), lambda b: (b, 0, 0)),   # emb
                rep(w1.shape), rep(b1.shape),                          # W1, b1
                rep(w2.shape), rep(b2.shape),                          # W2, b2
                rep(w3a.shape), rep(w3b.shape),                        # W3 split
                rep(b3.shape),                                         # b3
            ],
            out_specs=pl.BlockSpec((Bt, Ns_p, Dsem), lambda b: (b, 0, 0)),
            compiler_params=pltpu.CompilerParams(
                dimension_semantics=("parallel",),
                vmem_limit_bytes=vmem_limit),
        )(vis_p, emb_p, w1, b1, w2, b2, w3a, w3b, b3)

    try:
        out_p = run(True)
        out_p = jax.block_until_ready(out_p)
    except Exception:
        # Fallback for jax versions without BlockSpec(pipeline_mode=...).
        out_p = run(False)

    return out_p[:, :Ns, :] if Ns_p != Ns else out_p


# ----------------------------------------------------------------------------
# Parameters (torch weight_norm(dim=None) folded; embed dim pre-padded once)
# ----------------------------------------------------------------------------
def _weight_norm_dim_none(v, g):
    # torch weight_norm(dim=None): w = g * v / ||v||_F  (g is a scalar)
    return g * v / jnp.linalg.norm(v)


def init_params(key, obj_dim, sem_dim, embed_dim):
    ks = jax.random.split(key, 6)
    scale = 0.05
    v1 = scale * jax.random.normal(ks[0], (obj_dim, embed_dim), jnp.float32)
    v2 = scale * jax.random.normal(ks[1], (sem_dim, embed_dim), jnp.float32)
    v3 = scale * jax.random.normal(ks[2], (2 * embed_dim, sem_dim), jnp.float32)
    b1 = scale * jax.random.normal(ks[3], (1, embed_dim), jnp.float32)
    b2 = scale * jax.random.normal(ks[4], (1, embed_dim), jnp.float32)
    b3 = scale * jax.random.normal(ks[5], (1, sem_dim), jnp.float32)
    g1 = 1.1 * jnp.linalg.norm(v1)
    g2 = 0.9 * jnp.linalg.norm(v2)
    g3 = 1.05 * jnp.linalg.norm(v3)
    w1 = _weight_norm_dim_none(v1, g1)
    w2 = _weight_norm_dim_none(v2, g2)
    w3 = _weight_norm_dim_none(v3, g3)
    w3a, w3b = w3[:embed_dim], w3[embed_dim:]   # == concat(emb_proj, i_att) split

    # Pad the internal embed dim to lane width ONCE here (zero cols / zero bias
    # => ReLU outputs 0 in the padded columns => exact no-op downstream).
    e_p = _round_up(embed_dim, 128)
    w1 = _pad_to(w1, 1, e_p)
    w2 = _pad_to(w2, 1, e_p)
    b1 = _pad_to(b1, 1, e_p)
    b2 = _pad_to(b2, 1, e_p)
    w3a = _pad_to(w3a, 0, e_p)
    w3b = _pad_to(w3b, 0, e_p)
    return (w1, b1, w2, b2, w3a, w3b, b3)


def reference(vis, emb, params):
    w1, b1, w2, b2, w3a, w3b, b3 = params
    vis_proj = jax.nn.relu(vis @ w1 + b1)
    emb_proj = jax.nn.relu(emb @ w2 + b2)
    sim = jnp.einsum('bsd,bvd->bsv', emb_proj, vis_proj)
    att = jax.nn.softmax(sim, axis=2)
    i_att = jnp.einsum('bsv,bvd->bsd', att, vis_proj)
    comb = jax.nn.relu(emb_proj @ w3a + i_att @ w3b + b3)
    return comb + emb


if __name__ == "__main__":
    # Small shapes consistent with the module (im_sem_embed_dim is the internal
    # embed dim; obj_dim/sem_dim are the node feature widths).
    B, Nv, Ns = 2, 16, 8
    obj_dim = sem_dim = 64
    embed_dim = 32

    key = jax.random.PRNGKey(0)
    k_vis, k_emb, k_par = jax.random.split(key, 3)
    vis = jax.random.normal(k_vis, (B, Nv, obj_dim), jnp.float32)
    emb = jax.random.normal(k_emb, (B, Ns, sem_dim), jnp.float32)
    params = init_params(k_par, obj_dim, sem_dim, embed_dim)

    out = semantic_graph_aggregator(vis, emb, params)
    out = jax.block_until_ready(out)

    ref = reference(vis, emb, params)
    assert out.shape == (B, Ns, sem_dim)
    # Tolerance relaxed slightly: softmax normalizer uses the EUP approximate
    # reciprocal (pl.reciprocal(approx=True)).
    assert jnp.allclose(out, ref, atol=1e-3, rtol=1e-3), "mismatch vs reference"
    print("KERNEL_OK")
</pallas_src>

<mosaic_0001>
module attributes {stable_mosaic.version = 11 : i64} {
  func.func @_aggregator_kernel(%arg0: i32, %arg1: memref<1x128x64xf32, #tpu.memory_space<vmem>>, %arg2: memref<1x8x64xf32, #tpu.memory_space<vmem>>, %arg3: memref<64x128xf32, #tpu.memory_space<vmem>>, %arg4: memref<1x128xf32, #tpu.memory_space<vmem>>, %arg5: memref<64x128xf32, #tpu.memory_space<vmem>>, %arg6: memref<1x128xf32, #tpu.memory_space<vmem>>, %arg7: memref<128x64xf32, #tpu.memory_space<vmem>>, %arg8: memref<128x64xf32, #tpu.memory_space<vmem>>, %arg9: memref<1x64xf32, #tpu.memory_space<vmem>>, %arg10: memref<1x8x64xf32, #tpu.memory_space<vmem>>) attributes {dimension_semantics = [#tpu.dimension_semantics<parallel>], iteration_bounds = array<i64: 2>, scalar_prefetch = 0 : i64, scratch_operands = 0 : i64, tpu.core_type = #tpu.core_type<tc>, window_params = [{transform_indices = @transform_0, window_bounds = array<i64: 1, 128, 64>}, {transform_indices = @transform_1, window_bounds = array<i64: 1, 8, 64>}, {pipeline_mode = #tpu.pipeline_mode<synchronous>, transform_indices = @transform_2, window_bounds = array<i64: 64, 128>}, {pipeline_mode = #tpu.pipeline_mode<synchronous>, transform_indices = @transform_3, window_bounds = array<i64: 1, 128>}, {pipeline_mode = #tpu.pipeline_mode<synchronous>, transform_indices = @transform_4, window_bounds = array<i64: 64, 128>}, {pipeline_mode = #tpu.pipeline_mode<synchronous>, transform_indices = @transform_5, window_bounds = array<i64: 1, 128>}, {pipeline_mode = #tpu.pipeline_mode<synchronous>, transform_indices = @transform_6, window_bounds = array<i64: 128, 64>}, {pipeline_mode = #tpu.pipeline_mode<synchronous>, transform_indices = @transform_7, window_bounds = array<i64: 128, 64>}, {pipeline_mode = #tpu.pipeline_mode<synchronous>, transform_indices = @transform_8, window_bounds = array<i64: 1, 64>}, {transform_indices = @transform_9, window_bounds = array<i64: 1, 8, 64>}]} {
    %c0 = arith.constant 0 : index
    %c0_0 = arith.constant 0 : index
    %c0_1 = arith.constant 0 : index
    %0 = vector.load %arg1[%c0, %c0_0, %c0_1] : memref<1x128x64xf32, #tpu.memory_space<vmem>>, vector<1x128x64xf32>
    %1 = vector.shape_cast %0 : vector<1x128x64xf32> to vector<128x64xf32>
    %c0_2 = arith.constant 0 : index
    %c0_3 = arith.constant 0 : index
    %c0_4 = arith.constant 0 : index
    %2 = vector.load %arg2[%c0_2, %c0_3, %c0_4] : memref<1x8x64xf32, #tpu.memory_space<vmem>>, vector<1x8x64xf32>
    %3 = vector.shape_cast %2 : vector<1x8x64xf32> to vector<8x64xf32>
    %c0_5 = arith.constant 0 : index
    %c0_6 = arith.constant 0 : index
    %4 = vector.load %arg3[%c0_5, %c0_6] : memref<64x128xf32, #tpu.memory_space<vmem>>, vector<64x128xf32>
    %cst = arith.constant dense<0.000000e+00> : vector<128x128xf32>
    %5 = tpu.matmul %1, %4, %cst {dimension_numbers = #tpu.dot_dimension_numbers<[1], [0], [0], [1], [0, 0, 1, 1], [], []>} : vector<128x64xf32>, vector<64x128xf32>, vector<128x128xf32> -> vector<128x128xf32>
    %c0_7 = arith.constant 0 : index
    %c0_8 = arith.constant 0 : index
    %6 = vector.load %arg4[%c0_7, %c0_8] : memref<1x128xf32, #tpu.memory_space<vmem>>, vector<1x128xf32>
    %7 = vector.broadcast %6 : vector<1x128xf32> to vector<128x128xf32>
    %8 = arith.addf %5, %7 : vector<128x128xf32>
    %cst_9 = arith.constant 0.000000e+00 : f32
    %9 = vector.broadcast %cst_9 : f32 to vector<128x128xf32>
    %10 = arith.maximumf %8, %9 : vector<128x128xf32>
    %c0_10 = arith.constant 0 : index
    %c0_11 = arith.constant 0 : index
    %11 = vector.load %arg5[%c0_10, %c0_11] : memref<64x128xf32, #tpu.memory_space<vmem>>, vector<64x128xf32>
    %cst_12 = arith.constant dense<0.000000e+00> : vector<8x128xf32>
    %12 = tpu.matmul %3, %11, %cst_12 {dimension_numbers = #tpu.dot_dimension_numbers<[1], [0], [0], [1], [0, 0, 1, 1], [], []>} : vector<8x64xf32>, vector<64x128xf32>, vector<8x128xf32> -> vector<8x128xf32>
    %c0_13 = arith.constant 0 : index
    %c0_14 = arith.constant 0 : index
    %13 = vector.load %arg6[%c0_13, %c0_14] : memref<1x128xf32, #tpu.memory_space<vmem>>, vector<1x128xf32>
    %14 = vector.broadcast %13 : vector<1x128xf32> to vector<8x128xf32>
    %15 = arith.addf %12, %14 : vector<8x128xf32>
    %cst_15 = arith.constant 0.000000e+00 : f32
    %16 = vector.broadcast %cst_15 : f32 to vector<8x128xf32>
    %17 = arith.maximumf %15, %16 : vector<8x128xf32>
    %18 = vector.shape_cast %10 : vector<128x128xf32> to vector<1x128x128xf32>
    %19 = vector.shape_cast %17 : vector<8x128xf32> to vector<1x8x128xf32>
    %cst_16 = arith.constant dense<0.000000e+00> : vector<1x8x128xf32>
    %20 = tpu.matmul %19, %18, %cst_16 {dimension_numbers = #tpu.dot_dimension_numbers<[2], [2], [1], [1], [0, 0, 0, 1, 1, 1], [0], [0]>} : vector<1x8x128xf32>, vector<1x128x128xf32>, vector<1x8x128xf32> -> vector<1x8x128xf32>
    %21 = tpu.iota {dimensions = array<i32: 2>} : vector<1x8x128xi32>
    %c16_i32 = arith.constant 16 : i32
    %22 = vector.broadcast %c16_i32 : i32 to vector<1x8x128xi32>
    %23 = arith.cmpi slt, %21, %22 : vector<1x8x128xi32>
    %cst_17 = arith.constant -1.000000e+30 : f32
    %24 = vector.broadcast %cst_17 : f32 to vector<1x8x128xf32>
    %25 = arith.select %23, %20, %24 : vector<1x8x128xi1>, vector<1x8x128xf32>
    %cst_18 = arith.constant dense<0xFF800000> : vector<1x8xf32>
    %26 = vector.multi_reduction <maximumf>, %25, %cst_18 [2] : vector<1x8x128xf32> to vector<1x8xf32>
    %27 = vector.shape_cast %26 : vector<1x8xf32> to vector<1x8x1xf32>
    %28 = vector.broadcast %27 : vector<1x8x1xf32> to vector<1x8x128xf32>
    %29 = arith.subf %25, %28 : vector<1x8x128xf32>
    %30 = math.exp %29 : vector<1x8x128xf32>
    %cst_19 = arith.constant dense<0.000000e+00> : vector<1x8xf32>
    %31 = vector.multi_reduction <add>, %30, %cst_19 [2] : vector<1x8x128xf32> to vector<1x8xf32>
    %32 = vector.shape_cast %31 : vector<1x8xf32> to vector<1x8x1xf32>
    %33 = tpu.reciprocal %32 {approx = true} : vector<1x8x1xf32> -> vector<1x8x1xf32>
    %34 = vector.broadcast %33 : vector<1x8x1xf32> to vector<1x8x128xf32>
    %35 = arith.mulf %30, %34 : vector<1x8x128xf32>
    %cst_20 = arith.constant dense<0.000000e+00> : vector<1x8x128xf32>
    %36 = tpu.matmul %35, %18, %cst_20 {dimension_numbers = #tpu.dot_dimension_numbers<[2], [1], [1], [2], [0, 0, 0, 1, 1, 2], [0], [0]>} : vector<1x8x128xf32>, vector<1x128x128xf32>, vector<1x8x128xf32> -> vector<1x8x128xf32>
    %37 = vector.shape_cast %36 : vector<1x8x128xf32> to vector<8x128xf32>
    %c0_21 = arith.constant 0 : index
    %c0_22 = arith.constant 0 : index
    %38 = vector.load %arg7[%c0_21, %c0_22] : memref<128x64xf32, #tpu.memory_space<vmem>>, vector<128x64xf32>
    %cst_23 = arith.constant dense<0.000000e+00> : vector<8x64xf32>
    %39 = tpu.matmul %17, %38, %cst_23 {dimension_numbers = #tpu.dot_dimension_numbers<[1], [0], [0], [1], [0, 0, 1, 1], [], []>} : vector<8x128xf32>, vector<128x64xf32>, vector<8x64xf32> -> vector<8x64xf32>
    %c0_24 = arith.constant 0 : index
    %c0_25 = arith.constant 0 : index
    %40 = vector.load %arg8[%c0_24, %c0_25] : memref<128x64xf32, #tpu.memory_space<vmem>>, vector<128x64xf32>
    %cst_26 = arith.constant dense<0.000000e+00> : vector<8x64xf32>
    %41 = tpu.matmul %37, %40, %cst_26 {dimension_numbers = #tpu.dot_dimension_numbers<[1], [0], [0], [1], [0, 0, 1, 1], [], []>} : vector<8x128xf32>, vector<128x64xf32>, vector<8x64xf32> -> vector<8x64xf32>
    %42 = arith.addf %39, %41 : vector<8x64xf32>
    %c0_27 = arith.constant 0 : index
    %c0_28 = arith.constant 0 : index
    %43 = vector.load %arg9[%c0_27, %c0_28] : memref<1x64xf32, #tpu.memory_space<vmem>>, vector<1x64xf32>
    %44 = vector.broadcast %43 : vector<1x64xf32> to vector<8x64xf32>
    %45 = arith.addf %42, %44 : vector<8x64xf32>
    %cst_29 = arith.constant 0.000000e+00 : f32
    %46 = vector.broadcast %cst_29 : f32 to vector<8x64xf32>
    %47 = arith.maximumf %45, %46 : vector<8x64xf32>
    %48 = arith.addf %47, %3 : vector<8x64xf32>
    %49 = vector.shape_cast %48 : vector<8x64xf32> to vector<1x8x64xf32>
    %c0_30 = arith.constant 0 : index
    %c0_31 = arith.constant 0 : index
    %c0_32 = arith.constant 0 : index
    %50 = vector.load %arg10[%c0_30, %c0_31, %c0_32] : memref<1x8x64xf32, #tpu.memory_space<vmem>>, vector<1x8x64xf32>
    tpu.vector_store %arg10[%c0_30, %c0_31, %c0_32], %49 {strides = array<i32>} : memref<1x8x64xf32, #tpu.memory_space<vmem>>, vector<1x8x64xf32>,
    return
  }
  func.func @transform_0(%arg0: i32) -> (i32, i32, i32) {
    %c0_i32 = arith.constant 0 : i32
    %c0_i32_0 = arith.constant 0 : i32
    %c0_i32_1 = arith.constant 0 : i32
    return %arg0, %c0_i32, %c0_i32_0 : i32, i32, i32
  }
  func.func @transform_1(%arg0: i32) -> (i32, i32, i32) {
    %c0_i32 = arith.constant 0 : i32
    %c0_i32_0 = arith.constant 0 : i32
    %c0_i32_1 = arith.constant 0 : i32
    return %arg0, %c0_i32, %c0_i32_0 : i32, i32, i32
  }
  func.func @transform_2(%arg0: i32) -> (i32, i32) {
    %c0_i32 = arith.constant 0 : i32
    %c0_i32_0 = arith.constant 0 : i32
    %c0_i32_1 = arith.constant 0 : i32
    return %c0_i32, %c0_i32_0 : i32, i32
  }
  func.func @transform_3(%arg0: i32) -> (i32, i32) {
    %c0_i32 = arith.constant 0 : i32
    %c0_i32_0 = arith.constant 0 : i32
    %c0_i32_1 = arith.constant 0 : i32
    return %c0_i32, %c0_i32_0 : i32, i32
  }
  func.func @transform_4(%arg0: i32) -> (i32, i32) {
    %c0_i32 = arith.constant 0 : i32
    %c0_i32_0 = arith.constant 0 : i32
    %c0_i32_1 = arith.constant 0 : i32
    return %c0_i32, %c0_i32_0 : i32, i32
  }
  func.func @transform_5(%arg0: i32) -> (i32, i32) {
    %c0_i32 = arith.constant 0 : i32
    %c0_i32_0 = arith.constant 0 : i32
    %c0_i32_1 = arith.constant 0 : i32
    return %c0_i32, %c0_i32_0 : i32, i32
  }
  func.func @transform_6(%arg0: i32) -> (i32, i32) {
    %c0_i32 = arith.constant 0 : i32
    %c0_i32_0 = arith.constant 0 : i32
    %c0_i32_1 = arith.constant 0 : i32
    return %c0_i32, %c0_i32_0 : i32, i32
  }
  func.func @transform_7(%arg0: i32) -> (i32, i32) {
    %c0_i32 = arith.constant 0 : i32
    %c0_i32_0 = arith.constant 0 : i32
    %c0_i32_1 = arith.constant 0 : i32
    return %c0_i32, %c0_i32_0 : i32, i32
  }
  func.func @transform_8(%arg0: i32) -> (i32, i32) {
    %c0_i32 = arith.constant 0 : i32
    %c0_i32_0 = arith.constant 0 : i32
    %c0_i32_1 = arith.constant 0 : i32
    return %c0_i32, %c0_i32_0 : i32, i32
  }
  func.func @transform_9(%arg0: i32) -> (i32, i32, i32) {
    %c0_i32 = arith.constant 0 : i32
    %c0_i32_0 = arith.constant 0 : i32
    %c0_i32_1 = arith.constant 0 : i32
    return %arg0, %c0_i32, %c0_i32_0 : i32, i32, i32
  }
}

module attributes {stable_mosaic.version = 11 : i64} {
  func.func @_aggregator_kernel(%arg0: i32, %arg1: memref<1x128x64xf32, #tpu.memory_space<vmem>>, %arg2: memref<1x8x64xf32, #tpu.memory_space<vmem>>, %arg3: memref<64x128xf32, #tpu.memory_space<vmem>>, %arg4: memref<1x128xf32, #tpu.memory_space<vmem>>, %arg5: memref<64x128xf32, #tpu.memory_space<vmem>>, %arg6: memref<1x128xf32, #tpu.memory_space<vmem>>, %arg7: memref<128x64xf32, #tpu.memory_space<vmem>>, %arg8: memref<128x64xf32, #tpu.memory_space<vmem>>, %arg9: memref<1x64xf32, #tpu.memory_space<vmem>>, %arg10: memref<1x8x64xf32, #tpu.memory_space<vmem>>) attributes {dimension_semantics = [#tpu.dimension_semantics<parallel>], iteration_bounds = array<i64: 2>, scalar_prefetch = 0 : i64, scratch_operands = 0 : i64, tpu.core_type = #tpu.core_type<tc>, window_params = [{transform_indices = @transform_0, window_bounds = array<i64: 1, 128, 64>}, {transform_indices = @transform_1, window_bounds = array<i64: 1, 8, 64>}, {pipeline_mode = #tpu.pipeline_mode<synchronous>, transform_indices = @transform_2, window_bounds = array<i64: 64, 128>}, {pipeline_mode = #tpu.pipeline_mode<synchronous>, transform_indices = @transform_3, window_bounds = array<i64: 1, 128>}, {pipeline_mode = #tpu.pipeline_mode<synchronous>, transform_indices = @transform_4, window_bounds = array<i64: 64, 128>}, {pipeline_mode = #tpu.pipeline_mode<synchronous>, transform_indices = @transform_5, window_bounds = array<i64: 1, 128>}, {pipeline_mode = #tpu.pipeline_mode<synchronous>, transform_indices = @transform_6, window_bounds = array<i64: 128, 64>}, {pipeline_mode = #tpu.pipeline_mode<synchronous>, transform_indices = @transform_7, window_bounds = array<i64: 128, 64>}, {pipeline_mode = #tpu.pipeline_mode<synchronous>, transform_indices = @transform_8, window_bounds = array<i64: 1, 64>}, {transform_indices = @transform_9, window_bounds = array<i64: 1, 8, 64>}]} {
    %c0 = arith.constant 0 : index
    %c0_0 = arith.constant 0 : index
    %c0_1 = arith.constant 0 : index
    %0 = vector.load %arg1[%c0, %c0_0, %c0_1] : memref<1x128x64xf32, #tpu.memory_space<vmem>>, vector<1x128x64xf32>
    %1 = vector.shape_cast %0 : vector<1x128x64xf32> to vector<128x64xf32>
    %c0_2 = arith.constant 0 : index
    %c0_3 = arith.constant 0 : index
    %c0_4 = arith.constant 0 : index
    %2 = vector.load %arg2[%c0_2, %c0_3, %c0_4] : memref<1x8x64xf32, #tpu.memory_space<vmem>>, vector<1x8x64xf32>
    %3 = vector.shape_cast %2 : vector<1x8x64xf32> to vector<8x64xf32>
    %c0_5 = arith.constant 0 : index
    %c0_6 = arith.constant 0 : index
    %4 = vector.load %arg3[%c0_5, %c0_6] : memref<64x128xf32, #tpu.memory_space<vmem>>, vector<64x128xf32>
    %cst = arith.constant dense<0.000000e+00> : vector<128x128xf32>
    %5 = tpu.matmul %1, %4, %cst {dimension_numbers = #tpu.dot_dimension_numbers<[1], [0], [0], [1], [0, 0, 1, 1], [], []>} : vector<128x64xf32>, vector<64x128xf32>, vector<128x128xf32> -> vector<128x128xf32>
    %c0_7 = arith.constant 0 : index
    %c0_8 = arith.constant 0 : index
    %6 = vector.load %arg4[%c0_7, %c0_8] : memref<1x128xf32, #tpu.memory_space<vmem>>, vector<1x128xf32>
    %7 = vector.broadcast %6 : vector<1x128xf32> to vector<128x128xf32>
    %8 = arith.addf %5, %7 : vector<128x128xf32>
    %cst_9 = arith.constant 0.000000e+00 : f32
    %9 = vector.broadcast %cst_9 : f32 to vector<128x128xf32>
    %10 = arith.maximumf %8, %9 : vector<128x128xf32>
    %c0_10 = arith.constant 0 : index
    %c0_11 = arith.constant 0 : index
    %11 = vector.load %arg5[%c0_10, %c0_11] : memref<64x128xf32, #tpu.memory_space<vmem>>, vector<64x128xf32>
    %cst_12 = arith.constant dense<0.000000e+00> : vector<8x128xf32>
    %12 = tpu.matmul %3, %11, %cst_12 {dimension_numbers = #tpu.dot_dimension_numbers<[1], [0], [0], [1], [0, 0, 1, 1], [], []>} : vector<8x64xf32>, vector<64x128xf32>, vector<8x128xf32> -> vector<8x128xf32>
    %c0_13 = arith.constant 0 : index
    %c0_14 = arith.constant 0 : index
    %13 = vector.load %arg6[%c0_13, %c0_14] : memref<1x128xf32, #tpu.memory_space<vmem>>, vector<1x128xf32>
    %14 = vector.broadcast %13 : vector<1x128xf32> to vector<8x128xf32>
    %15 = arith.addf %12, %14 : vector<8x128xf32>
    %cst_15 = arith.constant 0.000000e+00 : f32
    %16 = vector.broadcast %cst_15 : f32 to vector<8x128xf32>
    %17 = arith.maximumf %15, %16 : vector<8x128xf32>
    %18 = vector.shape_cast %10 : vector<128x128xf32> to vector<1x128x128xf32>
    %19 = vector.shape_cast %17 : vector<8x128xf32> to vector<1x8x128xf32>
    %cst_16 = arith.constant dense<0.000000e+00> : vector<1x8x128xf32>
    %20 = tpu.matmul %19, %18, %cst_16 {dimension_numbers = #tpu.dot_dimension_numbers<[2], [2], [1], [1], [0, 0, 0, 1, 1, 1], [0], [0]>} : vector<1x8x128xf32>, vector<1x128x128xf32>, vector<1x8x128xf32> -> vector<1x8x128xf32>
    %21 = tpu.iota {dimensions = array<i32: 2>} : vector<1x8x128xi32>
    %c16_i32 = arith.constant 16 : i32
    %22 = vector.broadcast %c16_i32 : i32 to vector<1x8x128xi32>
    %23 = arith.cmpi slt, %21, %22 : vector<1x8x128xi32>
    %cst_17 = arith.constant -1.000000e+30 : f32
    %24 = vector.broadcast %cst_17 : f32 to vector<1x8x128xf32>
    %25 = arith.select %23, %20, %24 : vector<1x8x128xi1>, vector<1x8x128xf32>
    %cst_18 = arith.constant dense<0xFF800000> : vector<1x8xf32>
    %26 = vector.multi_reduction <maximumf>, %25, %cst_18 [2] : vector<1x8x128xf32> to vector<1x8xf32>
    %27 = vector.shape_cast %26 : vector<1x8xf32> to vector<1x8x1xf32>
    %28 = vector.broadcast %27 : vector<1x8x1xf32> to vector<1x8x128xf32>
    %29 = arith.subf %25, %28 : vector<1x8x128xf32>
    %30 = math.exp %29 : vector<1x8x128xf32>
    %cst_19 = arith.constant dense<0.000000e+00> : vector<1x8xf32>
    %31 = vector.multi_reduction <add>, %30, %cst_19 [2] : vector<1x8x128xf32> to vector<1x8xf32>
    %32 = vector.shape_cast %31 : vector<1x8xf32> to vector<1x8x1xf32>
    %33 = tpu.reciprocal %32 {approx = true} : vector<1x8x1xf32> -> vector<1x8x1xf32>
    %34 = vector.broadcast %33 : vector<1x8x1xf32> to vector<1x8x128xf32>
    %35 = arith.mulf %30, %34 : vector<1x8x128xf32>
    %cst_20 = arith.constant dense<0.000000e+00> : vector<1x8x128xf32>
    %36 = tpu.matmul %35, %18, %cst_20 {dimension_numbers = #tpu.dot_dimension_numbers<[2], [1], [1], [2], [0, 0, 0, 1, 1, 2], [0], [0]>} : vector<1x8x128xf32>, vector<1x128x128xf32>, vector<1x8x128xf32> -> vector<1x8x128xf32>
    %37 = vector.shape_cast %36 : vector<1x8x128xf32> to vector<8x128xf32>
    %c0_21 = arith.constant 0 : index
    %c0_22 = arith.constant 0 : index
    %38 = vector.load %arg7[%c0_21, %c0_22] : memref<128x64xf32, #tpu.memory_space<vmem>>, vector<128x64xf32>
    %cst_23 = arith.constant dense<0.000000e+00> : vector<8x64xf32>
    %39 = tpu.matmul %17, %38, %cst_23 {dimension_numbers = #tpu.dot_dimension_numbers<[1], [0], [0], [1], [0, 0, 1, 1], [], []>} : vector<8x128xf32>, vector<128x64xf32>, vector<8x64xf32> -> vector<8x64xf32>
    %c0_24 = arith.constant 0 : index
    %c0_25 = arith.constant 0 : index
    %40 = vector.load %arg8[%c0_24, %c0_25] : memref<128x64xf32, #tpu.memory_space<vmem>>, vector<128x64xf32>
    %cst_26 = arith.constant dense<0.000000e+00> : vector<8x64xf32>
    %41 = tpu.matmul %37, %40, %cst_26 {dimension_numbers = #tpu.dot_dimension_numbers<[1], [0], [0], [1], [0, 0, 1, 1], [], []>} : vector<8x128xf32>, vector<128x64xf32>, vector<8x64xf32> -> vector<8x64xf32>
    %42 = arith.addf %39, %41 : vector<8x64xf32>
    %c0_27 = arith.constant 0 : index
    %c0_28 = arith.constant 0 : index
    %43 = vector.load %arg9[%c0_27, %c0_28] : memref<1x64xf32, #tpu.memory_space<vmem>>, vector<1x64xf32>
    %44 = vector.broadcast %43 : vector<1x64xf32> to vector<8x64xf32>
    %45 = arith.addf %42, %44 : vector<8x64xf32>
    %cst_29 = arith.constant 0.000000e+00 : f32
    %46 = vector.broadcast %cst_29 : f32 to vector<8x64xf32>
    %47 = arith.maximumf %45, %46 : vector<8x64xf32>
    %48 = arith.addf %47, %3 : vector<8x64xf32>
    %49 = vector.shape_cast %48 : vector<8x64xf32> to vector<1x8x64xf32>
    %c0_30 = arith.constant 0 : index
    %c0_31 = arith.constant 0 : index
    %c0_32 = arith.constant 0 : index
    %50 = vector.load %arg10[%c0_30, %c0_31, %c0_32] : memref<1x8x64xf32, #tpu.memory_space<vmem>>, vector<1x8x64xf32>
    tpu.vector_store %arg10[%c0_30, %c0_31, %c0_32], %49 {strides = array<i32>} : memref<1x8x64xf32, #tpu.memory_space<vmem>>, vector<1x8x64xf32>,
    return
  }
  func.func @transform_0(%arg0: i32) -> (i32, i32, i32) {
    %c0_i32 = arith.constant 0 : i32
    %c0_i32_0 = arith.constant 0 : i32
    %c0_i32_1 = arith.constant 0 : i32
    return %arg0, %c0_i32, %c0_i32_0 : i32, i32, i32
  }
  func.func @transform_1(%arg0: i32) -> (i32, i32, i32) {
    %c0_i32 = arith.constant 0 : i32
    %c0_i32_0 = arith.constant 0 : i32
    %c0_i32_1 = arith.constant 0 : i32
    return %arg0, %c0_i32, %c0_i32_0 : i32, i32, i32
  }
  func.func @transform_2(%arg0: i32) -> (i32, i32) {
    %c0_i32 = arith.constant 0 : i32
    %c0_i32_0 = arith.constant 0 : i32
    %c0_i32_1 = arith.constant 0 : i32
    return %c0_i32, %c0_i32_0 : i32, i32
  }
  func.func @transform_3(%arg0: i32) -> (i32, i32) {
    %c0_i32 = arith.constant 0 : i32
    %c0_i32_0 = arith.constant 0 : i32
    %c0_i32_1 = arith.constant 0 : i32
    return %c0_i32, %c0_i32_0 : i32, i32
  }
  func.func @transform_4(%arg0: i32) -> (i32, i32) {
    %c0_i32 = arith.constant 0 : i32
    %c0_i32_0 = arith.constant 0 : i32
    %c0_i32_1 = arith.constant 0 : i32
    return %c0_i32, %c0_i32_0 : i32, i32
  }
  func.func @transform_5(%arg0: i32) -> (i32, i32) {
    %c0_i32 = arith.constant 0 : i32
    %c0_i32_0 = arith.constant 0 : i32
    %c0_i32_1 = arith.constant 0 : i32
    return %c0_i32, %c0_i32_0 : i32, i32
  }
  func.func @transform_6(%arg0: i32) -> (i32, i32) {
    %c0_i32 = arith.constant 0 : i32
    %c0_i32_0 = arith.constant 0 : i32
    %c0_i32_1 = arith.constant 0 : i32
    return %c0_i32, %c0_i32_0 : i32, i32
  }
  func.func @transform_7(%arg0: i32) -> (i32, i32) {
    %c0_i32 = arith.constant 0 : i32
    %c0_i32_0 = arith.constant 0 : i32
    %c0_i32_1 = arith.constant 0 : i32
    return %c0_i32, %c0_i32_0 : i32, i32
  }
  func.func @transform_8(%arg0: i32) -> (i32, i32) {
    %c0_i32 = arith.constant 0 : i32
    %c0_i32_0 = arith.constant 0 : i32
    %c0_i32_1 = arith.constant 0 : i32
    return %c0_i32, %c0_i32_0 : i32, i32
  }
  func.func @transform_9(%arg0: i32) -> (i32, i32, i32) {
    %c0_i32 = arith.constant 0 : i32
    %c0_i32_0 = arith.constant 0 : i32
    %c0_i32_1 = arith.constant 0 : i32
    return %arg0, %c0_i32, %c0_i32_0 : i32, i32, i32
  }
}

</mosaic_0001>

<bundles_post_ra>
// kernel: tpu_custom_call.1
= control target key start
LH: loop header
LB: loop body
LE: loop exit
PB: predicated region body
PF: predicated region fallthrough
CT: control target
= control target key end

     0   :  { %14 = vsyncpa [#allocation3], 0  ;;  %s2088_s0 = inlined_call_operand.vmem [shape: f32[2,128,64], index: 0, kind: input, shape index: {}]   ;;  %s2089_s1 = inlined_call_operand.vmem [shape: f32[2,8,64], index: 1, kind: input, shape index: {}]   ;;  %s2090_s2 = inlined_call_operand.vmem [shape: f32[64,128], index: 2, kind: input, shape index: {}]   ;;  %s2091_s3 = inlined_call_operand.vmem [shape: f32[1,128], index: 3, kind: input, shape index: {}]   ;;  %s2092_s4 = inlined_call_operand.vmem [shape: f32[64,128], index: 4, kind: input, shape index: {}]   ;;  %s2093_s5 = inlined_call_operand.vmem [shape: f32[1,128], index: 5, kind: input, shape index: {}]   ;;  %s2094_s6 = inlined_call_operand.vmem [shape: f32[128,64], index: 6, kind: input, shape index: {}]   ;;  %s2095_s7 = inlined_call_operand.vmem [shape: f32[128,64], index: 7, kind: input, shape index: {}]   ;;  %s2096_s8 = inlined_call_operand.vmem [shape: f32[1,64], index: 8, kind: input, shape index: {}]   ;;  %s2097_s9 = inlined_call_operand.hbm [shape: f32[2,8,64], index: 9, kind: output, shape index: {}]  }
   0x1   :  { %16 = vsyncpa [#allocation3 + $0x1], 0  ;;  %s1721_s30 = smov 0   ;;  %s1723_s10 = smov 0  }
   0x2   :  { %s1725_s11 = smov 0   ;;  %s1727_s12 = smov 0  }
   0x3 LB: > { %s1742_s13 = sadd.s32 4294967295, %s1665_s12   ;;  %s1100_s14 = sadd.s32 4294967294, %s1665_s12   ;;  %s1665_s12 = sphi %s1727_s12, %s2103_s12   ;;  %s1661_s11 = sphi %s1725_s11, %s2102_s11   ;;  %s1657_s10 = sphi %s1723_s10, %s2101_s10   ;;  %s1653_s30 = sphi %s1721_s30, %s2100_s30  }
   0x4   : > { %s1746_s15 = sadd.s32 1, %s1665_s12   ;;  %s228_s16 = sadd.s32 1, %s1661_s11 }
   0x5   : > { %s225_s17 = ssub.s32 %s1665_s12, %s1746_s15  ;;  %p238_p0 = scmp.ne.s32.totalorder %s1661_s11, %s1657_s10 }
   0x6   : > { %p226_p1 = scmp.eq.s32.totalorder %s225_s17, 0  ;;  %p239_p2 = scmp.eq.s32.totalorder %s1742_s13, 1 }
   0x7   : > { %p244_p3 = scmp.ne.s32.totalorder %s1657_s10, %s1653_s30  ;;  %p245_p4 = scmp.eq.s32.totalorder %s1100_s14, 1 }
   0x8   : > { %s1757_s18 = scalar_select %p226_p1, %s1661_s11, %s228_s16  }
   0x9   : > { %p1759_p5 = por %p239_p2, %p238_p0  ;;  %p1763_p6 = por %p245_p4, %p244_p3 }
   0xa   : > { %p1103_p7 = scmp.ge.s32.totalorder %s1665_s12, 1  ;;  %p299_p8 = scmp.lt.s32.totalorder %s1665_s12, 3 }
   0xc   : > { %p300_p9 = pnand %p1103_p7, %p299_p8 }
   0xd   : > { %v365_v0 = vld [vmem:[%s2090_s2] sm:$0xff] (!%p300_p9)  ;;  %v366_v1 = vld [vmem:[%s2090_s2 + $0x8] sm:$0xff] (!%p300_p9)  ;;  %v367_v2 = vld [vmem:[%s2090_s2 + $0x10] sm:$0xff] (!%p300_p9)  ;;  %p339_p10 = scmp.lt.s32.totalorder (!%p300_p9), %s1742_s13, 1  ;;  %v1667_v5 = vmov (!%p300_p9), 0.0|0.0   ;;  %vm1668_vm0 = vmmov (!%p300_p9), 0  }
   0xe   : > { %303 = sbr.rel (%p300_p9) target bundleno = 1285 (0x505), region = 56  ;;  %v1433_v3 = vpack.c.bf16 (!%p300_p9), %v366_v1, %v365_v0  ;;  %v368_v4 = vld [vmem:[%s2090_s2 + $0x18] sm:$0xff] (!%p300_p9)  ;;  %1449 = vmatprep.subr.bf16.mxu1 (!%p300_p9), %v1667_v5  ;;  %v369_v7 = vld [vmem:[%s2090_s2 + $0x20] sm:$0xff] (!%p300_p9)  ;;  %v370_v8 = vld [vmem:[%s2090_s2 + $0x28] sm:$0xff] (!%p300_p9)  ;;  %v1669_v10 = vmov (!%p300_p9), 0.0   ;;  %vm380_vm1 = vcmask (!%p300_p9), 523264  }
   0xf   : > { %v1437_v6 = vpack.c.bf16 (!%p300_p9), %v368_v4, %v367_v2  ;;  %v590_v9 = vld [vmem:[%s2092_s4] sm:$0xff] (!%p300_p9)  ;;  %1290 = vmatprep.mubr.msk.f32.mxu1 (!%p300_p9), %vm1668_vm0, %v1669_v10  ;;  %v591_v11 = vld [vmem:[%s2092_s4 + $0x8] sm:$0xff] (!%p300_p9)  ;;  %v592_v12 = vld [vmem:[%s2092_s4 + $0x10] sm:$0xff] (!%p300_p9)  ;;  %v1441_v15 = vpack.c.bf16 (!%p300_p9), %v370_v8, %v369_v7 }
  0x10   : > { %1434 = vmatprep.subr.bf16.mxu0 (!%p300_p9), %v1433_v3  ;;  %v593_v13 = vld [vmem:[%s2092_s4 + $0x18] sm:$0xff] (!%p300_p9)  ;;  %v1450_v14 = vpack.c.bf16 (!%p300_p9), %v591_v11, %v590_v9  ;;  %v371_v16 = vld [vmem:[%s2090_s2 + $0x30] sm:$0xff] (!%p300_p9)  ;;  %v594_v20 = vld [vmem:[%s2092_s4 + $0x20] sm:$0xff] (!%p300_p9) }
  0x11   : > { %1436 = vmatpush3.bf16.msra.mxu0 (!%p300_p9), %v1433_v3  ;;  %v372_v17 = vld [vmem:[%s2090_s2 + $0x38] sm:$0xff] (!%p300_p9)  ;;  %v1453_v19 = vpack.c.bf16 (!%p300_p9), %v593_v13, %v592_v12  ;;  %v595_v21 = vld [vmem:[%s2092_s4 + $0x28] sm:$0xff] (!%p300_p9)  ;;  %v596_v24 = vld [vmem:[%s2092_s4 + $0x30] sm:$0xff] (!%p300_p9) }
  0x12   : > { %1438 = vmatprep.subr.bf16.mxu0 (!%p300_p9), %v1437_v6  ;;  %1451 = vmatpush3.bf16.msra.mxu1 (!%p300_p9), %v1450_v14  ;;  %v1445_v22 = vpack.c.bf16 (!%p300_p9), %v372_v17, %v371_v16  ;;  %v1456_v23 = vpack.c.bf16 (!%p300_p9), %v595_v21, %v594_v20  ;;  %v597_v25 = vld [vmem:[%s2092_s4 + $0x38] sm:$0xff] (!%p300_p9)  ;;  %v1882_v43 = vld [vmem:[%s2091_s3] ss:$0 sm:$0xff] (!%p300_p9) }
  0x13   : > { %1452 = vmatprep.subr.bf16.mxu1 (!%p300_p9), %v1667_v5  ;;  %v1459_v26 = vpack.c.bf16 (!%p300_p9), %v597_v25, %v596_v24 }
  0x15   : > { %s1790_s21 = scalar_select %p339_p10, %s1742_s13, 1  ;;  %1440 = vmatpush3.bf16.msra.mxu0 %v1437_v6 }
  0x16   : > { %1442 = vmatprep.subr.bf16.mxu0 %v1441_v15  ;;  %1454 = vmatpush3.bf16.msra.mxu1 %v1453_v19 }
  0x17   : > { %s1132_s14 = sshll.u32 %s1790_s21, 7  ;;  %1455 = vmatprep.subr.bf16.mxu1 %v1667_v5  ;;  %s1107_s25 = sshll.u32 %s1790_s21, 3 }
  0x18   : > { %s1810_s22 = scalar_lea.vmem %s2088_s0, %s1132_s14  ;;  %s347_s28 = scalar_lea.vmem %s2089_s1, %s1107_s25 }
  0x19   : > { %v348_v18 = vld [vmem:[%s1810_s22] sm:$0xff]  ;;  %1444 = vmatpush3.bf16.msra.mxu0 %v1441_v15  ;;  %v349_v27 = vld [vmem:[%s1810_s22 + $0x8] sm:$0xff]  ;;  %v350_v28 = vld [vmem:[%s1810_s22 + $0x10] sm:$0xff]  ;;  %s336_s25 = sand.u32 1, %s1657_s10   ;;  %s1129_s21 = sshll.u32 %s1742_s13, 7 }
  0x1a   : > { %1250 = vmatprep.mubr.msk.f32.mxu0 %vm380_vm1, %v348_v18  ;;  %1446 = vmatprep.subr.bf16.mxu0 %v1445_v22  ;;  %v1842_v29 = vld [vmem:[%s347_s28] sm:$0xff]  ;;  %v351_v30 = vld [vmem:[%s1810_s22 + $0x18] sm:$0xff]  ;;  %v353_v32 = vld [vmem:[%s1810_s22 + $0x28] sm:$0xff]  ;;  %s1104_s26 = sshll.u32 %s336_s25, 3  ;;  %s2045_s17 = scalar_lea.hbm %s2097_s9, %s1129_s21 }
  0x1b   : > { %1457 = vmatpush3.bf16.msra.mxu1 %v1456_v23  ;;  %v352_v31 = vld [vmem:[%s1810_s22 + $0x20] sm:$0xff]  ;;  %v354_v33 = vld [vmem:[%s1810_s22 + $0x30] sm:$0xff]  ;;  %v355_v34 = vld [vmem:[%s1810_s22 + $0x38] sm:$0xff]  ;;  %s338_s29 = scalar_lea.vmem [#allocation2], %s1104_s26  ;;  %s1016_s23 = scalar_lea.sflag [#allocation3], %s336_s25 }
  0x1c   : > { %1458 = vmatprep.subr.bf16.mxu1 %v1667_v5  ;;  %v356_v35 = vld [vmem:[%s1810_s22 + $0x40] sm:$0xff]  ;;  %v357_v36 = vld [vmem:[%s1810_s22 + $0x48] sm:$0xff]  ;;  %v358_v37 = vld [vmem:[%s1810_s22 + $0x50] sm:$0xff]  ;;  %s1670_s13 = smov [#allocation2]  }
  0x1d   : > { %1448 = vmatpush3.bf16.msra.mxu0 %v1445_v22  ;;  %v359_v38 = vld [vmem:[%s1810_s22 + $0x58] sm:$0xff]  ;;  %v360_v39 = vld [vmem:[%s1810_s22 + $0x60] sm:$0xff]  ;;  %v361_v40 = vld [vmem:[%s1810_s22 + $0x68] sm:$0xff]  ;;  %s1607_s26 = sshll.u32 %s1670_s13, 4  ;;  %s1608_s26 = int_to_ptr.vmem [resolvable:$false] %s1607_s26 }
  0x1e   : > { %1461 = vmatprep.subr.bf16.mxu0 %v1667_v5  ;;  %v362_v41 = vld [vmem:[%s1810_s22 + $0x70] sm:$0xff]  ;;  %v363_v42 = vld [vmem:[%s1810_s22 + $0x78] sm:$0xff]  ;;  %s1029_s22 = sshll.u32 %s338_s29, 4  ;;  %s1609_s27 = scalar_lea.vmem %s1608_s26, 256  ;;  %s2047_s22 = int_to_ptr.vmem [resolvable:$true] %s1029_s22 }
  0x1f   : > { %1460 = vmatpush3.bf16.msra.mxu1 %v1459_v26  ;;  %s1603_s24 = scalar_lea.vmem %s2047_s22, 128  ;;  %p1610_p0 = scmp.lt.s32.totalorder %s2047_s22, %s1608_s26 }
  0x20   : > { %1251 = vmatmul.mubr.msk.f32.vlgmr.msra.gmra.mrb[0].mxu0 %vm380_vm1, %v349_v27  ;;  %1485 = vmatprep.subr.bf16.mxu1 %v1667_v5  ;;  %p1604_p11 = scmp.ne.s32.totalorder %s2047_s22, %s1603_s24  ;;  %p1611_p1 = scmp.lt.s32.totalorder %s1609_s27, %s1603_s24 }
  0x21   : > { %1253 = vmatprep.mubr.msk.f32.mxu0 %vm380_vm1, %v350_v28 }
  0x22   : > { %1291 = vmatmul.mubr.msk.f32.vlgmr.msra.gmra.mrb[0].mxu1 %vm380_vm1, %v1842_v29  ;;  %p1605_p12 = pnand %p1604_p11, %p1759_p5  ;;  %p1612_p2 = por %p1611_p1, %p1610_p0 }
  0x23   : > { %1360 = vmatprep.mubr.msk.f32.mxu1 %vm1668_vm0, %v1669_v10 }
  0x24   : > { %1254 = vmatmul.mubr.msk.f32.gmra.mrb[2].mxu0 %vm380_vm1, %v351_v30  ;;  %p1606_p13 = pneg %p1605_p12 }
  0x25   : > { %1256 = vmatprep.mubr.msk.f32.mxu0 %vm380_vm1, %v352_v31 }
  0x26   : > { %p1613_p3 = pnand %p1612_p2, %p1606_p13 }
  0x28   : > { %1257 = vmatmul.mubr.msk.f32.gmra.mrb[4].mxu0 %vm380_vm1, %v353_v32 }
  0x29   : > { %1259 = vmatprep.mubr.msk.f32.mxu0 %vm380_vm1, %v354_v33 }
  0x2c   : > { %1260 = vmatmul.mubr.msk.f32.gmra.mrb[6].mxu0 %vm380_vm1, %v355_v34 }
  0x2d   : > { %1262 = vmatprep.mubr.msk.f32.mxu0 %vm380_vm1, %v356_v35 }
  0x30   : > { %1263 = vmatmul.mubr.msk.f32.gmra.mrb[8].mxu0 %vm380_vm1, %v357_v36 }
  0x31   : > { %1265 = vmatprep.mubr.msk.f32.mxu0 %vm380_vm1, %v358_v37 }
  0x34   : > { %1266 = vmatmul.mubr.msk.f32.gmra.mrb[10].mxu0 %vm380_vm1, %v359_v38 }
  0x35   : > { %1268 = vmatprep.mubr.msk.f32.mxu0 %vm380_vm1, %v360_v39 }
  0x38   : > { %1269 = vmatmul.mubr.msk.f32.gmra.mrb[12].mxu0 %vm380_vm1, %v361_v40 }
  0x39   : > { %1271 = vmatprep.mubr.msk.f32.mxu0 %vm380_vm1, %v362_v41  ;;  %v1125_v41 = vld [vmem:[%s2093_s5] ss:$0 sm:$0xff] }
  0x3c   : > { %1272 = vmatmul.mubr.msk.f32.gmra.mrb[14].mxu0 %vm380_vm1, %v363_v42 }
  0x3d   : > { %1325 = vmatprep.mubr.msk.f32.mxu0 %vm1668_vm0, %v1669_v10 }
  0xf3   : > { %v1252_v44 = vpop.f32.mrb[0].mxu0 }
  0xf4   : > { %v501_v45 = vadd.f32 %v1252_v44, %v1882_v43  ;;  %v495_v46 = vpop.f32.mrb[1].mxu0  ;;  %v833_v44 = vld [vmem:[%s2094_s6 + $0x8] sm:$0xff] }
  0xf5   : > { %v496_v47 = vadd.f32 %v1882_v43, %v495_v46  ;;  %v1886_v48 = vpop.f32.mrb[0].mxu1 }
  0xf6   : > { %v575_v49 = vmax.f32 %v501_v45, 0.0  ;;  %v1292_v50 = vpop.f32.mrb[1].mxu1  ;;  %v675_v42 = vadd.f32 %v1125_v41, %v1886_v48  ;;  %v835_v48 = vld [vmem:[%s2094_s6 + $0x18] sm:$0xff]  ;;  %v862_v41 = vld [vmem:[%s2095_s7 + $0x70] sm:$0xff] }
  0xf7   : > { %v574_v51 = vmax.f32 %v496_v47, 0.0  ;;  %v1255_v52 = vpop.f32.mrb[2].mxu0  ;;  %v834_v47 = vld [vmem:[%s2094_s6 + $0x10] sm:$0xff]  ;;  %v836_v50 = vld [vmem:[%s2094_s6 + $0x20] sm:$0xff] }
  0xf8   : > { %v511_v53 = vadd.f32 %v1255_v52, %v1882_v43  ;;  %v505_v54 = vpop.f32.mrb[3].mxu0  ;;  %v678_v45 = vmax.f32 %v675_v42, 0.0  ;;  %v863_v42 = vld [vmem:[%s2095_s7 + $0x78] sm:$0xff] }
  0xf9   : > { %v1462_v55 = vpack.c.bf16 %v575_v49, %v574_v51  ;;  %v506_v56 = vadd.f32 %v1882_v43, %v505_v54  ;;  %v1537_v49 = vpack.c.bf16 %v835_v48, %v834_v47  ;;  %v837_v51 = vld [vmem:[%s2094_s6 + $0x28] sm:$0xff]  ;;  %v839_v54 = vld [vmem:[%s2094_s6 + $0x38] sm:$0xff]  ;;  %v1127_v47 = vld [vmem:[%s2096_s8] ss:$0 sm:$0xff] }
  0xfa   : > { %v577_v57 = vmax.f32 %v511_v53, 0.0  ;;  %v1540_v52 = vpack.c.bf16 %v837_v51, %v836_v50  ;;  %v838_v53 = vld [vmem:[%s2094_s6 + $0x30] sm:$0xff] }
  0xfb   : > { %v576_v58 = vmax.f32 %v506_v56, 0.0  ;;  %1463 = vmatpush3.bf16.xpose.msra.mxu0 %v1462_v55  ;;  %1487 = vmatpush3.bf16.msra.mxu1 %v1462_v55  ;;  %v1258_v59 = vpop.f32.mrb[4].mxu0  ;;  %v1543_v55 = vpack.c.bf16 %v839_v54, %v838_v53  ;;  %v840_v56 = vld [vmem:[%s2094_s6 + $0x40] sm:$0xff] }
  0xfc   : > { %1488 = vmatprep.subr.bf16.mxu1 %v1667_v5  ;;  %v521_v60 = vadd.f32 %v1258_v59, %v1882_v43  ;;  %1464 = vmatprep.subr.bf16.mxu0 %v1667_v5  ;;  %v515_v61 = vpop.f32.mrb[5].mxu0  ;;  %v842_v59 = vld [vmem:[%s2094_s6 + $0x50] sm:$0xff] }
  0xfd   : > { %v1465_v62 = vpack.c.bf16 %v577_v57, %v576_v58  ;;  %v516_v63 = vadd.f32 %v1882_v43, %v515_v61  ;;  %v841_v57 = vld [vmem:[%s2094_s6 + $0x48] sm:$0xff] }
  0xfe   : > { %v579_v0 = vmax.f32 %v521_v60, 0.0  ;;  %v1546_v58 = vpack.c.bf16 %v841_v57, %v840_v56  ;;  %v843_v60 = vld [vmem:[%s2094_s6 + $0x58] sm:$0xff] }
  0xff   : > { %1490 = vmatpush3.bf16.msra.mxu1 %v1465_v62  ;;  %v578_v1 = vmax.f32 %v516_v63, 0.0  ;;  %v1261_v2 = vpop.f32.mrb[6].mxu0  ;;  %v1549_v61 = vpack.c.bf16 %v843_v60, %v842_v59  ;;  %v845_v63 = vld [vmem:[%s2094_s6 + $0x68] sm:$0xff] }
 0x100   : > { %1491 = vmatprep.subr.bf16.mxu1 %v1667_v5  ;;  %v531_v3 = vadd.f32 %v1261_v2, %v1882_v43  ;;  %v525_v4 = vpop.f32.mrb[7].mxu0  ;;  %v847_v2 = vld [vmem:[%s2094_s6 + $0x78] sm:$0xff] }
 0x101   : > { %v1468_v6 = vpack.c.bf16 %v579_v0, %v578_v1  ;;  %v526_v7 = vadd.f32 %v1882_v43, %v525_v4  ;;  %v846_v1 = vld [vmem:[%s2094_s6 + $0x70] sm:$0xff]  ;;  %v749_v4 = vlaneseq }
 0x102   : > { %v581_v8 = vmax.f32 %v531_v3, 0.0  ;;  %v1555_v3 = vpack.c.bf16 %v847_v2, %v846_v1 }
 0x103   : > { %1466 = vmatpush3.bf16.xpose.msra.mxu0 %v1465_v62  ;;  %1493 = vmatpush3.bf16.msra.mxu1 %v1468_v6  ;;  %v580_v9 = vmax.f32 %v526_v7, 0.0  ;;  %v1264_v11 = vpop.f32.mrb[8].mxu0  ;;  %v844_v62 = vld [vmem:[%s2094_s6 + $0x60] sm:$0xff] }
 0x104   : > { %1467 = vmatprep.subr.bf16.mxu0 %v1667_v5  ;;  %1494 = vmatprep.subr.bf16.mxu1 %v1667_v5  ;;  %v541_v12 = vadd.f32 %v1264_v11, %v1882_v43  ;;  %v535_v13 = vpop.f32.mrb[9].mxu0  ;;  %v1552_v0 = vpack.c.bf16 %v845_v63, %v844_v62 }
 0x105   : > { %v1471_v14 = vpack.c.bf16 %v581_v8, %v580_v9  ;;  %v536_v15 = vadd.f32 %v1882_v43, %v535_v13 }
 0x106   : > { %v583_v16 = vmax.f32 %v541_v12, 0.0 }
 0x107   : > { %1496 = vmatpush3.bf16.msra.mxu1 %v1471_v14  ;;  %v582_v17 = vmax.f32 %v536_v15, 0.0  ;;  %v1267_v18 = vpop.f32.mrb[10].mxu0 }
 0x108   : > { %1497 = vmatprep.subr.bf16.mxu1 %v1667_v5  ;;  %v551_v19 = vadd.f32 %v1267_v18, %v1882_v43  ;;  %v545_v20 = vpop.f32.mrb[11].mxu0  ;;  %v848_v18 = vld [vmem:[%s2095_s7] sm:$0xff] }
 0x109   : > { %v1474_v21 = vpack.c.bf16 %v583_v16, %v582_v17  ;;  %v546_v22 = vadd.f32 %v1882_v43, %v545_v20 }
 0x10a   : > { %v585_v23 = vmax.f32 %v551_v19, 0.0  ;;  %v849_v19 = vld [vmem:[%s2095_s7 + $0x8] sm:$0xff] }
 0x10b   : > { %1469 = vmatpush3.bf16.xpose.msra.mxu0 %v1468_v6  ;;  %1499 = vmatpush3.bf16.msra.mxu1 %v1474_v21  ;;  %v584_v24 = vmax.f32 %v546_v22, 0.0  ;;  %v1270_v25 = vpop.f32.mrb[12].mxu0  ;;  %v750_v6 = vand.u32 127, %v749_v4 }
 0x10c   : > { %1470 = vmatprep.subr.bf16.mxu0 %v1667_v5  ;;  %1500 = vmatprep.subr.bf16.mxu1 %v1667_v5  ;;  %v561_v26 = vadd.f32 %v1270_v25, %v1882_v43  ;;  %v555_v27 = vpop.f32.mrb[13].mxu0 }
 0x10d   : > { %v1477_v28 = vpack.c.bf16 %v585_v23, %v584_v24  ;;  %v556_v30 = vadd.f32 %v1882_v43, %v555_v27  ;;  %vm751_vm2 = vcmp.lt.s32.totalorder %v750_v6, 16  ;;  %v850_v23 = vld [vmem:[%s2095_s7 + $0x10] sm:$0xff]  ;;  %v851_v24 = vld [vmem:[%s2095_s7 + $0x18] sm:$0xff]  ;;  %v853_v27 = vld [vmem:[%s2095_s7 + $0x28] sm:$0xff] }
 0x10e   : > { %v587_v31 = vmax.f32 %v561_v26, 0.0  ;;  %v1513_v25 = vpack.c.bf16 %v851_v24, %v850_v23  ;;  %v852_v26 = vld [vmem:[%s2095_s7 + $0x20] sm:$0xff] }
 0x10f   : > { %1502 = vmatpush3.bf16.msra.mxu1 %v1477_v28  ;;  %v586_v32 = vmax.f32 %v556_v30, 0.0  ;;  %v1273_v33 = vpop.f32.mrb[14].mxu0  ;;  %v854_v30 = vld [vmem:[%s2095_s7 + $0x30] sm:$0xff] }
 0x110   : > { %1503 = vmatprep.subr.bf16.mxu1 %v1667_v5  ;;  %v571_v34 = vadd.f32 %v1273_v33, %v1882_v43  ;;  %v565_v35 = vpop.f32.mrb[15].mxu0  ;;  %v857_v33 = vld [vmem:[%s2095_s7 + $0x48] sm:$0xff] }
 0x111   : > { %v1480_v36 = vpack.c.bf16 %v587_v31, %v586_v32  ;;  %v566_v37 = vadd.f32 %v1882_v43, %v565_v35  ;;  %v832_v43 = vld [vmem:[%s2094_s6] sm:$0xff]  ;;  %v858_v35 = vld [vmem:[%s2095_s7 + $0x50] sm:$0xff] }
 0x112   : > { %v589_v38 = vmax.f32 %v571_v34, 0.0  ;;  %v1534_v46 = vpack.c.bf16 %v833_v44, %v832_v43  ;;  %v856_v32 = vld [vmem:[%s2095_s7 + $0x40] sm:$0xff]  ;;  %v1531_v43 = vpack.c.bf16 %v863_v42, %v862_v41 }
 0x113   : > { %1472 = vmatpush3.bf16.xpose.msra.mxu0 %v1471_v14  ;;  %1505 = vmatpush3.bf16.msra.mxu1 %v1480_v36  ;;  %v588_v39 = vmax.f32 %v566_v37, 0.0  ;;  %v1522_v34 = vpack.c.bf16 %v857_v33, %v856_v32 }
 0x114   : > { %1473 = vmatprep.subr.bf16.mxu0 %v1667_v5  ;;  %1506 = vmatprep.subr.bf16.mxu1 %v1667_v5 }
 0x115   : > { %v1483_v40 = vpack.c.bf16 %v589_v38, %v588_v39  ;;  %v860_v38 = vld [vmem:[%s2095_s7 + $0x60] sm:$0xff]  ;;  %v861_v39 = vld [vmem:[%s2095_s7 + $0x68] sm:$0xff] }
 0x117   : > { %1508 = vmatpush3.bf16.msra.mxu1 %v1483_v40 }
 0x118   : > { %1509 = vmatprep.subr.bf16.mxu1 %v1667_v5 }
 0x11b   : > { %1475 = vmatpush3.bf16.xpose.msra.mxu0 %v1474_v21  ;;  %v1510_v21 = vpack.c.bf16 %v849_v19, %v848_v18 }
 0x11c   : > { %1476 = vmatprep.subr.bf16.mxu0 %v1667_v5 }
 0x123   : > { %1478 = vmatpush3.bf16.xpose.msra.mxu0 %v1477_v28  ;;  %v1516_v28 = vpack.c.bf16 %v853_v27, %v852_v26 }
 0x124   : > { %1479 = vmatprep.subr.bf16.mxu0 %v1667_v5 }
 0x12b   : > { %1481 = vmatpush3.bf16.xpose.msra.mxu0 %v1480_v36  ;;  %v859_v36 = vld [vmem:[%s2095_s7 + $0x58] sm:$0xff] }
 0x12c   : > { %1482 = vmatprep.subr.bf16.mxu0 %v1667_v5  ;;  %v1525_v37 = vpack.c.bf16 %v859_v36, %v858_v35 }
 0x133   : > { %1484 = vmatpush3.bf16.xpose.msra.mxu0 %v1483_v40  ;;  %v1528_v40 = vpack.c.bf16 %v861_v39, %v860_v38 }
 0x134   : > { %1533 = vmatprep.subr.bf16.mxu0 %v1667_v5 }
 0x13a   : > { %1326 = vmatmul.mubr.f32.vlgmr.msra.gmra.mrb[16].mxu0 %v678_v45 }
 0x13b   : > { %1535 = vmatpush3.bf16.msra.mxu0 %v1534_v46  ;;  %1430 = vmatprep.mubr.msk.f32.mxu0 %vm1668_vm0, %v1669_v10 }
 0x13c   : > { %1536 = vmatprep.subr.bf16.mxu0 %v1667_v5 }
 0x13f   : > { %1538 = vmatpush3.bf16.msra.mxu0 %v1537_v49 }
 0x140   : > { %1539 = vmatprep.subr.bf16.mxu0 %v1667_v5 }
 0x143   : > { %1541 = vmatpush3.bf16.msra.mxu0 %v1540_v52 }
 0x144   : > { %1542 = vmatprep.subr.bf16.mxu0 %v1667_v5 }
 0x147   : > { %1544 = vmatpush3.bf16.msra.mxu0 %v1543_v55 }
 0x148   : > { %1545 = vmatprep.subr.bf16.mxu0 %v1667_v5 }
 0x14b   : > { %1547 = vmatpush3.bf16.msra.mxu0 %v1546_v58 }
 0x14c   : > { %1548 = vmatprep.subr.bf16.mxu0 %v1667_v5 }
 0x14f   : > { %1550 = vmatpush3.bf16.msra.mxu0 %v1549_v61 }
 0x150   : > { %1551 = vmatprep.subr.bf16.mxu0 %v1667_v5 }
 0x153   : > { %1553 = vmatpush3.bf16.msra.mxu0 %v1552_v0 }
 0x154   : > { %1554 = vmatprep.subr.bf16.mxu0 %v1667_v5 }
 0x157   : > { %1556 = vmatpush3.bf16.msra.mxu0 %v1555_v3 }
 0x15a   : > { %1431 = vmatmul.mubr.f32.vlgmr.msra.gmra.mrb[18].mxu0 %v678_v45 }
 0x20d   : > { %v745_v7 = vpop.f32.mrb[16].mxu0 }
 0x20e   : > { %v1327_v8 = vpop.f32.mrb[17].mxu0  ;;  %v752_v9 = vsel %vm751_vm2, %v745_v7, -1e+30 }
 0x20f   : > { %753 = vmax.xlane.f32.xlu0 %v752_v9 }
 0x22d   : > { %v1000_v11 = vpop.f32.mrb[18].mxu0 }
 0x22e   : > { %v1432_v12 = vpop.f32.mrb[19].mxu0 }
 0x29c   : > { %v754_v13 = vpop.xlane.xlu0 %753 }
 0x29d   : > { %v755_v14 = vsub.f32 %v752_v9, %v754_v13 }
 0x29f   : > { %v756_v15 = vmul.f32 1.442695, %v755_v14 }
 0x2a1   : > { %1599 = vpow2.f32 %v756_v15 }
 0x2ab   : > { %v1600_v16 = vpop.eup %1599 }
 0x2ac   : > { %758 = vadd.xlane.f32.xlu0 %v1600_v16 }
 0x339   : > { %v759_v17 = vpop.xlane.xlu0 %758 }
 0x33a   : > { %1601 = vrcp.f32 %v759_v17 }
 0x344   : > { %v1602_v20 = vpop.eup %1601 }
 0x345   : > { %v761_v22 = vmul.f32 %v1602_v20, %v1600_v16 }
 0x347   : > { %1361 = vmatmul.mubr.f32.vlgmr.msra.gmra.mrb[2].mxu1 %v761_v22 }
 0x348   : > { %1511 = vmatpush3.bf16.msra.mxu1 %v1510_v21  ;;  %1395 = vmatprep.mubr.msk.f32.mxu1 %vm1668_vm0, %v1669_v10  ;;  %v855_v10 = vld [vmem:[%s2095_s7 + $0x38] sm:$0xff] }
 0x349   : > { %1512 = vmatprep.subr.bf16.mxu1 %v1667_v5  ;;  %v1519_v31 = vpack.c.bf16 %v855_v10, %v854_v30 }
 0x34c   : > { %1514 = vmatpush3.bf16.msra.mxu1 %v1513_v25 }
 0x34d   : > { %1515 = vmatprep.subr.bf16.mxu1 %v1667_v5 }
 0x350   : > { %1517 = vmatpush3.bf16.msra.mxu1 %v1516_v28 }
 0x351   : > { %1518 = vmatprep.subr.bf16.mxu1 %v1667_v5 }
 0x354   : > { %1520 = vmatpush3.bf16.msra.mxu1 %v1519_v31 }
 0x355   : > { %1521 = vmatprep.subr.bf16.mxu1 %v1667_v5 }
 0x358   : > { %1523 = vmatpush3.bf16.msra.mxu1 %v1522_v34 }
 0x359   : > { %1524 = vmatprep.subr.bf16.mxu1 %v1667_v5 }
 0x35c   : > { %1526 = vmatpush3.bf16.msra.mxu1 %v1525_v37 }
 0x35d   : > { %1527 = vmatprep.subr.bf16.mxu1 %v1667_v5 }
 0x360   : > { %1529 = vmatpush3.bf16.msra.mxu1 %v1528_v40 }
 0x361   : > { %1530 = vmatprep.subr.bf16.mxu1 %v1667_v5 }
 0x364   : > { %1532 = vmatpush3.bf16.msra.mxu1 %v1531_v43 }
 0x41a   : > { %v828_v44 = vpop.f32.mrb[2].mxu1 }
 0x41b   : > { %v1362_v45 = vpop.f32.mrb[3].mxu1  ;;  %1396 = vmatmul.mubr.f32.vlgmr.msra.gmra.mrb[4].mxu1 %v828_v44 }
 0x4ee   : > { %v930_v46 = vpop.f32.mrb[4].mxu1 }
 0x4ef   : > { %v1001_v48 = vadd.f32 %v1000_v11, %v930_v46  ;;  %v1397_v49 = vpop.f32.mrb[5].mxu1 }
 0x4f1   : > { %v1011_v50 = vadd.f32 %v1127_v47, %v1001_v48 }
 0x4f3   : > { %v1012_v51 = vmax.f32 %v1011_v50, 0.0 }
 0x4f5   : > { %v1013_v5 = vadd.f32 %v1012_v51, %v1842_v29 }
 0x4f7   : > { %1014 = vst.msk [vmem:[%s338_s29] sm:$0xff] %vm380_vm1, %v1013_v5 }
 0x4f8   : > { %1616 = shalt.err (!%p1613_p3)
}
 0x4f9   : > { %s1617_s25 = scalar_lea.hbm %s2045_s17, 128  ;;  %s1621_s29 = scalar_lea.hbm %s2097_s9, 256 }
 0x4fa   : > { %p1618_p4 = scmp.ne.s32.totalorder %s2045_s17, %s1617_s25  ;;  %p1622_p9 = scmp.lt.u32.totalorder %s2045_s17, %s2097_s9 }
 0x4fb   : > { %p1623_p10 = scmp.lt.u32.totalorder %s1621_s29, %s1617_s25  ;;  %p1625_p12 = scmp.lt.u32.totalorder %s1617_s25, %s2045_s17 }
 0x4fc   : > { %p1619_p7 = pnand %p1618_p4, %p1759_p5 }
 0x4fd   : > { %p1624_p11 = por %p1623_p10, %p1622_p9 }
 0x4fe   : > { %p1620_p8 = pneg %p1619_p7 }
 0x4ff   : > { %p1626_p13 = por %p1625_p12, %p1624_p11 }
 0x501   : > { %p1627_p0 = pnand %p1626_p13, %p1620_p8 }
 0x503   : > { %1630 = shalt.err (!%p1627_p0)
}
 0x504   : > { %1557 = dma.vmem_to_hbm [thread:$0]  (%p1759_p5), %s2047_s22, 128, %s2045_s17, %s1016_s23  }
 0x505 PF: > { %p1563_p1 = scmp.ge.s32.totalorder %s1665_s12, 2  ;;  %s1041_s24 = sand.u32 1, %s1653_s30  }
 0x506   : > { %s1042_s13 = scalar_lea.sflag [#allocation3], %s1041_s24 }
 0x507   : > { %p1560_p2 = pnand %p1563_p1, %p1763_p6 }
 0x509   : > { %1648 = dma.done.wait (!%p1560_p2), %s1042_s13, 128  }
 0x50a   : > { %1650 = vsyncadd (!%p1560_p2), %s1042_s13, 4294967168  ;;  %p19_p3 = scmp.ge.s32.totalorder %s1746_s15, 4   ;;  %s2100_s30 = smov %s1657_s10 }
 0x50b   : > { %s2101_s10 = smov %s1661_s11  ;;  %s2102_s11 = smov %s1757_s18 }
 0x50c   : > { %s2103_s12 = smov %s1746_s15  ;;  %21 = sbr.rel (!%p19_p3) target bundleno = 3 (0x3), region = 94 }
 0x513   :  { %1047 = vsyncpa [#allocation3], 1 }
 0x514   :  { %1049 = vsyncpa [#allocation3 + $0x1], 1 }

// kernel: tpu_custom_call.1
= control target key start
LH: loop header
LB: loop body
LE: loop exit
PB: predicated region body
PF: predicated region fallthrough
CT: control target
= control target key end

     0   :  { %14 = vsyncpa [#allocation3], 0  ;;  %s2088_s0 = inlined_call_operand.vmem [shape: f32[2,128,64], index: 0, kind: input, shape index: {}]   ;;  %s2089_s1 = inlined_call_operand.vmem [shape: f32[2,8,64], index: 1, kind: input, shape index: {}]   ;;  %s2090_s2 = inlined_call_operand.vmem [shape: f32[64,128], index: 2, kind: input, shape index: {}]   ;;  %s2091_s3 = inlined_call_operand.vmem [shape: f32[1,128], index: 3, kind: input, shape index: {}]   ;;  %s2092_s4 = inlined_call_operand.vmem [shape: f32[64,128], index: 4, kind: input, shape index: {}]   ;;  %s2093_s5 = inlined_call_operand.vmem [shape: f32[1,128], index: 5, kind: input, shape index: {}]   ;;  %s2094_s6 = inlined_call_operand.vmem [shape: f32[128,64], index: 6, kind: input, shape index: {}]   ;;  %s2095_s7 = inlined_call_operand.vmem [shape: f32[128,64], index: 7, kind: input, shape index: {}]   ;;  %s2096_s8 = inlined_call_operand.vmem [shape: f32[1,64], index: 8, kind: input, shape index: {}]   ;;  %s2097_s9 = inlined_call_operand.hbm [shape: f32[2,8,64], index: 9, kind: output, shape index: {}]  }
   0x1   :  { %16 = vsyncpa [#allocation3 + $0x1], 0  ;;  %s1721_s30 = smov 0   ;;  %s1723_s10 = smov 0  }
   0x2   :  { %s1725_s11 = smov 0   ;;  %s1727_s12 = smov 0  }
   0x3 LB: > { %s1742_s13 = sadd.s32 4294967295, %s1665_s12   ;;  %s1100_s14 = sadd.s32 4294967294, %s1665_s12   ;;  %s1665_s12 = sphi %s1727_s12, %s2103_s12   ;;  %s1661_s11 = sphi %s1725_s11, %s2102_s11   ;;  %s1657_s10 = sphi %s1723_s10, %s2101_s10   ;;  %s1653_s30 = sphi %s1721_s30, %s2100_s30  }
   0x4   : > { %s1746_s15 = sadd.s32 1, %s1665_s12   ;;  %s228_s16 = sadd.s32 1, %s1661_s11 }
   0x5   : > { %s225_s17 = ssub.s32 %s1665_s12, %s1746_s15  ;;  %p238_p0 = scmp.ne.s32.totalorder %s1661_s11, %s1657_s10 }
   0x6   : > { %p226_p1 = scmp.eq.s32.totalorder %s225_s17, 0  ;;  %p239_p2 = scmp.eq.s32.totalorder %s1742_s13, 1 }
   0x7   : > { %p244_p3 = scmp.ne.s32.totalorder %s1657_s10, %s1653_s30  ;;  %p245_p4 = scmp.eq.s32.totalorder %s1100_s14, 1 }
   0x8   : > { %s1757_s18 = scalar_select %p226_p1, %s1661_s11, %s228_s16  }
   0x9   : > { %p1759_p5 = por %p239_p2, %p238_p0  ;;  %p1763_p6 = por %p245_p4, %p244_p3 }
   0xa   : > { %p1103_p7 = scmp.ge.s32.totalorder %s1665_s12, 1  ;;  %p299_p8 = scmp.lt.s32.totalorder %s1665_s12, 3 }
   0xc   : > { %p300_p9 = pnand %p1103_p7, %p299_p8 }
   0xd   : > { %v365_v0 = vld [vmem:[%s2090_s2] sm:$0xff] (!%p300_p9)  ;;  %v366_v1 = vld [vmem:[%s2090_s2 + $0x8] sm:$0xff] (!%p300_p9)  ;;  %v367_v2 = vld [vmem:[%s2090_s2 + $0x10] sm:$0xff] (!%p300_p9)  ;;  %p339_p10 = scmp.lt.s32.totalorder (!%p300_p9), %s1742_s13, 1  ;;  %v1667_v5 = vmov (!%p300_p9), 0.0|0.0   ;;  %vm1668_vm0 = vmmov (!%p300_p9), 0  }
   0xe   : > { %303 = sbr.rel (%p300_p9) target bundleno = 1285 (0x505), region = 56  ;;  %v1433_v3 = vpack.c.bf16 (!%p300_p9), %v366_v1, %v365_v0  ;;  %v368_v4 = vld [vmem:[%s2090_s2 + $0x18] sm:$0xff] (!%p300_p9)  ;;  %1449 = vmatprep.subr.bf16.mxu1 (!%p300_p9), %v1667_v5  ;;  %v369_v7 = vld [vmem:[%s2090_s2 + $0x20] sm:$0xff] (!%p300_p9)  ;;  %v370_v8 = vld [vmem:[%s2090_s2 + $0x28] sm:$0xff] (!%p300_p9)  ;;  %v1669_v10 = vmov (!%p300_p9), 0.0   ;;  %vm380_vm1 = vcmask (!%p300_p9), 523264  }
   0xf   : > { %v1437_v6 = vpack.c.bf16 (!%p300_p9), %v368_v4, %v367_v2  ;;  %v590_v9 = vld [vmem:[%s2092_s4] sm:$0xff] (!%p300_p9)  ;;  %1290 = vmatprep.mubr.msk.f32.mxu1 (!%p300_p9), %vm1668_vm0, %v1669_v10  ;;  %v591_v11 = vld [vmem:[%s2092_s4 + $0x8] sm:$0xff] (!%p300_p9)  ;;  %v592_v12 = vld [vmem:[%s2092_s4 + $0x10] sm:$0xff] (!%p300_p9)  ;;  %v1441_v15 = vpack.c.bf16 (!%p300_p9), %v370_v8, %v369_v7 }
  0x10   : > { %1434 = vmatprep.subr.bf16.mxu0 (!%p300_p9), %v1433_v3  ;;  %v593_v13 = vld [vmem:[%s2092_s4 + $0x18] sm:$0xff] (!%p300_p9)  ;;  %v1450_v14 = vpack.c.bf16 (!%p300_p9), %v591_v11, %v590_v9  ;;  %v371_v16 = vld [vmem:[%s2090_s2 + $0x30] sm:$0xff] (!%p300_p9)  ;;  %v594_v20 = vld [vmem:[%s2092_s4 + $0x20] sm:$0xff] (!%p300_p9) }
  0x11   : > { %1436 = vmatpush3.bf16.msra.mxu0 (!%p300_p9), %v1433_v3  ;;  %v372_v17 = vld [vmem:[%s2090_s2 + $0x38] sm:$0xff] (!%p300_p9)  ;;  %v1453_v19 = vpack.c.bf16 (!%p300_p9), %v593_v13, %v592_v12  ;;  %v595_v21 = vld [vmem:[%s2092_s4 + $0x28] sm:$0xff] (!%p300_p9)  ;;  %v596_v24 = vld [vmem:[%s2092_s4 + $0x30] sm:$0xff] (!%p300_p9) }
  0x12   : > { %1438 = vmatprep.subr.bf16.mxu0 (!%p300_p9), %v1437_v6  ;;  %1451 = vmatpush3.bf16.msra.mxu1 (!%p300_p9), %v1450_v14  ;;  %v1445_v22 = vpack.c.bf16 (!%p300_p9), %v372_v17, %v371_v16  ;;  %v1456_v23 = vpack.c.bf16 (!%p300_p9), %v595_v21, %v594_v20  ;;  %v597_v25 = vld [vmem:[%s2092_s4 + $0x38] sm:$0xff] (!%p300_p9)  ;;  %v1882_v43 = vld [vmem:[%s2091_s3] ss:$0 sm:$0xff] (!%p300_p9) }
  0x13   : > { %1452 = vmatprep.subr.bf16.mxu1 (!%p300_p9), %v1667_v5  ;;  %v1459_v26 = vpack.c.bf16 (!%p300_p9), %v597_v25, %v596_v24 }
  0x15   : > { %s1790_s21 = scalar_select %p339_p10, %s1742_s13, 1  ;;  %1440 = vmatpush3.bf16.msra.mxu0 %v1437_v6 }
  0x16   : > { %1442 = vmatprep.subr.bf16.mxu0 %v1441_v15  ;;  %1454 = vmatpush3.bf16.msra.mxu1 %v1453_v19 }
  0x17   : > { %s1132_s14 = sshll.u32 %s1790_s21, 7  ;;  %1455 = vmatprep.subr.bf16.mxu1 %v1667_v5  ;;  %s1107_s25 = sshll.u32 %s1790_s21, 3 }
  0x18   : > { %s1810_s22 = scalar_lea.vmem %s2088_s0, %s1132_s14  ;;  %s347_s28 = scalar_lea.vmem %s2089_s1, %s1107_s25 }
  0x19   : > { %v348_v18 = vld [vmem:[%s1810_s22] sm:$0xff]  ;;  %1444 = vmatpush3.bf16.msra.mxu0 %v1441_v15  ;;  %v349_v27 = vld [vmem:[%s1810_s22 + $0x8] sm:$0xff]  ;;  %v350_v28 = vld [vmem:[%s1810_s22 + $0x10] sm:$0xff]  ;;  %s336_s25 = sand.u32 1, %s1657_s10   ;;  %s1129_s21 = sshll.u32 %s1742_s13, 7 }
  0x1a   : > { %1250 = vmatprep.mubr.msk.f32.mxu0 %vm380_vm1, %v348_v18  ;;  %1446 = vmatprep.subr.bf16.mxu0 %v1445_v22  ;;  %v1842_v29 = vld [vmem:[%s347_s28] sm:$0xff]  ;;  %v351_v30 = vld [vmem:[%s1810_s22 + $0x18] sm:$0xff]  ;;  %v353_v32 = vld [vmem:[%s1810_s22 + $0x28] sm:$0xff]  ;;  %s1104_s26 = sshll.u32 %s336_s25, 3  ;;  %s2045_s17 = scalar_lea.hbm %s2097_s9, %s1129_s21 }
  0x1b   : > { %1457 = vmatpush3.bf16.msra.mxu1 %v1456_v23  ;;  %v352_v31 = vld [vmem:[%s1810_s22 + $0x20] sm:$0xff]  ;;  %v354_v33 = vld [vmem:[%s1810_s22 + $0x30] sm:$0xff]  ;;  %v355_v34 = vld [vmem:[%s1810_s22 + $0x38] sm:$0xff]  ;;  %s338_s29 = scalar_lea.vmem [#allocation2], %s1104_s26  ;;  %s1016_s23 = scalar_lea.sflag [#allocation3], %s336_s25 }
  0x1c   : > { %1458 = vmatprep.subr.bf16.mxu1 %v1667_v5  ;;  %v356_v35 = vld [vmem:[%s1810_s22 + $0x40] sm:$0xff]  ;;  %v357_v36 = vld [vmem:[%s1810_s22 + $0x48] sm:$0xff]  ;;  %v358_v37 = vld [vmem:[%s1810_s22 + $0x50] sm:$0xff]  ;;  %s1670_s13 = smov [#allocation2]  }
  0x1d   : > { %1448 = vmatpush3.bf16.msra.mxu0 %v1445_v22  ;;  %v359_v38 = vld [vmem:[%s1810_s22 + $0x58] sm:$0xff]  ;;  %v360_v39 = vld [vmem:[%s1810_s22 + $0x60] sm:$0xff]  ;;  %v361_v40 = vld [vmem:[%s1810_s22 + $0x68] sm:$0xff]  ;;  %s1607_s26 = sshll.u32 %s1670_s13, 4  ;;  %s1608_s26 = int_to_ptr.vmem [resolvable:$false] %s1607_s26 }
  0x1e   : > { %1461 = vmatprep.subr.bf16.mxu0 %v1667_v5  ;;  %v362_v41 = vld [vmem:[%s1810_s22 + $0x70] sm:$0xff]  ;;  %v363_v42 = vld [vmem:[%s1810_s22 + $0x78] sm:$0xff]  ;;  %s1029_s22 = sshll.u32 %s338_s29, 4  ;;  %s1609_s27 = scalar_lea.vmem %s1608_s26, 256  ;;  %s2047_s22 = int_to_ptr.vmem [resolvable:$true] %s1029_s22 }
  0x1f   : > { %1460 = vmatpush3.bf16.msra.mxu1 %v1459_v26  ;;  %s1603_s24 = scalar_lea.vmem %s2047_s22, 128  ;;  %p1610_p0 = scmp.lt.s32.totalorder %s2047_s22, %s1608_s26 }
  0x20   : > { %1251 = vmatmul.mubr.msk.f32.vlgmr.msra.gmra.mrb[0].mxu0 %vm380_vm1, %v349_v27  ;;  %1485 = vmatprep.subr.bf16.mxu1 %v1667_v5  ;;  %p1604_p11 = scmp.ne.s32.totalorder %s2047_s22, %s1603_s24  ;;  %p1611_p1 = scmp.lt.s32.totalorder %s1609_s27, %s1603_s24 }
  0x21   : > { %1253 = vmatprep.mubr.msk.f32.mxu0 %vm380_vm1, %v350_v28 }
  0x22   : > { %1291 = vmatmul.mubr.msk.f32.vlgmr.msra.gmra.mrb[0].mxu1 %vm380_vm1, %v1842_v29  ;;  %p1605_p12 = pnand %p1604_p11, %p1759_p5  ;;  %p1612_p2 = por %p1611_p1, %p1610_p0 }
  0x23   : > { %1360 = vmatprep.mubr.msk.f32.mxu1 %vm1668_vm0, %v1669_v10 }
  0x24   : > { %1254 = vmatmul.mubr.msk.f32.gmra.mrb[2].mxu0 %vm380_vm1, %v351_v30  ;;  %p1606_p13 = pneg %p1605_p12 }
  0x25   : > { %1256 = vmatprep.mubr.msk.f32.mxu0 %vm380_vm1, %v352_v31 }
  0x26   : > { %p1613_p3 = pnand %p1612_p2, %p1606_p13 }
  0x28   : > { %1257 = vmatmul.mubr.msk.f32.gmra.mrb[4].mxu0 %vm380_vm1, %v353_v32 }
  0x29   : > { %1259 = vmatprep.mubr.msk.f32.mxu0 %vm380_vm1, %v354_v33 }
  0x2c   : > { %1260 = vmatmul.mubr.msk.f32.gmra.mrb[6].mxu0 %vm380_vm1, %v355_v34 }
  0x2d   : > { %1262 = vmatprep.mubr.msk.f32.mxu0 %vm380_vm1, %v356_v35 }
  0x30   : > { %1263 = vmatmul.mubr.msk.f32.gmra.mrb[8].mxu0 %vm380_vm1, %v357_v36 }
  0x31   : > { %1265 = vmatprep.mubr.msk.f32.mxu0 %vm380_vm1, %v358_v37 }
  0x34   : > { %1266 = vmatmul.mubr.msk.f32.gmra.mrb[10].mxu0 %vm380_vm1, %v359_v38 }
  0x35   : > { %1268 = vmatprep.mubr.msk.f32.mxu0 %vm380_vm1, %v360_v39 }
  0x38   : > { %1269 = vmatmul.mubr.msk.f32.gmra.mrb[12].mxu0 %vm380_vm1, %v361_v40 }
  0x39   : > { %1271 = vmatprep.mubr.msk.f32.mxu0 %vm380_vm1, %v362_v41  ;;  %v1125_v41 = vld [vmem:[%s2093_s5] ss:$0 sm:$0xff] }
  0x3c   : > { %1272 = vmatmul.mubr.msk.f32.gmra.mrb[14].mxu0 %vm380_vm1, %v363_v42 }
  0x3d   : > { %1325 = vmatprep.mubr.msk.f32.mxu0 %vm1668_vm0, %v1669_v10 }
  0xf3   : > { %v1252_v44 = vpop.f32.mrb[0].mxu0 }
  0xf4   : > { %v501_v45 = vadd.f32 %v1252_v44, %v1882_v43  ;;  %v495_v46 = vpop.f32.mrb[1].mxu0  ;;  %v833_v44 = vld [vmem:[%s2094_s6 + $0x8] sm:$0xff] }
  0xf5   : > { %v496_v47 = vadd.f32 %v1882_v43, %v495_v46  ;;  %v1886_v48 = vpop.f32.mrb[0].mxu1 }
  0xf6   : > { %v575_v49 = vmax.f32 %v501_v45, 0.0  ;;  %v1292_v50 = vpop.f32.mrb[1].mxu1  ;;  %v675_v42 = vadd.f32 %v1125_v41, %v1886_v48  ;;  %v835_v48 = vld [vmem:[%s2094_s6 + $0x18] sm:$0xff]  ;;  %v862_v41 = vld [vmem:[%s2095_s7 + $0x70] sm:$0xff] }
  0xf7   : > { %v574_v51 = vmax.f32 %v496_v47, 0.0  ;;  %v1255_v52 = vpop.f32.mrb[2].mxu0  ;;  %v834_v47 = vld [vmem:[%s2094_s6 + $0x10] sm:$0xff]  ;;  %v836_v50 = vld [vmem:[%s2094_s6 + $0x20] sm:$0xff] }
  0xf8   : > { %v511_v53 = vadd.f32 %v1255_v52, %v1882_v43  ;;  %v505_v54 = vpop.f32.mrb[3].mxu0  ;;  %v678_v45 = vmax.f32 %v675_v42, 0.0  ;;  %v863_v42 = vld [vmem:[%s2095_s7 + $0x78] sm:$0xff] }
  0xf9   : > { %v1462_v55 = vpack.c.bf16 %v575_v49, %v574_v51  ;;  %v506_v56 = vadd.f32 %v1882_v43, %v505_v54  ;;  %v1537_v49 = vpack.c.bf16 %v835_v48, %v834_v47  ;;  %v837_v51 = vld [vmem:[%s2094_s6 + $0x28] sm:$0xff]  ;;  %v839_v54 = vld [vmem:[%s2094_s6 + $0x38] sm:$0xff]  ;;  %v1127_v47 = vld [vmem:[%s2096_s8] ss:$0 sm:$0xff] }
  0xfa   : > { %v577_v57 = vmax.f32 %v511_v53, 0.0  ;;  %v1540_v52 = vpack.c.bf16 %v837_v51, %v836_v50  ;;  %v838_v53 = vld [vmem:[%s2094_s6 + $0x30] sm:$0xff] }
  0xfb   : > { %v576_v58 = vmax.f32 %v506_v56, 0.0  ;;  %1463 = vmatpush3.bf16.xpose.msra.mxu0 %v1462_v55  ;;  %1487 = vmatpush3.bf16.msra.mxu1 %v1462_v55  ;;  %v1258_v59 = vpop.f32.mrb[4].mxu0  ;;  %v1543_v55 = vpack.c.bf16 %v839_v54, %v838_v53  ;;  %v840_v56 = vld [vmem:[%s2094_s6 + $0x40] sm:$0xff] }
  0xfc   : > { %1488 = vmatprep.subr.bf16.mxu1 %v1667_v5  ;;  %v521_v60 = vadd.f32 %v1258_v59, %v1882_v43  ;;  %1464 = vmatprep.subr.bf16.mxu0 %v1667_v5  ;;  %v515_v61 = vpop.f32.mrb[5].mxu0  ;;  %v842_v59 = vld [vmem:[%s2094_s6 + $0x50] sm:$0xff] }
  0xfd   : > { %v1465_v62 = vpack.c.bf16 %v577_v57, %v576_v58  ;;  %v516_v63 = vadd.f32 %v1882_v43, %v515_v61  ;;  %v841_v57 = vld [vmem:[%s2094_s6 + $0x48] sm:$0xff] }
  0xfe   : > { %v579_v0 = vmax.f32 %v521_v60, 0.0  ;;  %v1546_v58 = vpack.c.bf16 %v841_v57, %v840_v56  ;;  %v843_v60 = vld [vmem:[%s2094_s6 + $0x58] sm:$0xff] }
  0xff   : > { %1490 = vmatpush3.bf16.msra.mxu1 %v1465_v62  ;;  %v578_v1 = vmax.f32 %v516_v63, 0.0  ;;  %v1261_v2 = vpop.f32.mrb[6].mxu0  ;;  %v1549_v61 = vpack.c.bf16 %v843_v60, %v842_v59  ;;  %v845_v63 = vld [vmem:[%s2094_s6 + $0x68] sm:$0xff] }
 0x100   : > { %1491 = vmatprep.subr.bf16.mxu1 %v1667_v5  ;;  %v531_v3 = vadd.f32 %v1261_v2, %v1882_v43  ;;  %v525_v4 = vpop.f32.mrb[7].mxu0  ;;  %v847_v2 = vld [vmem:[%s2094_s6 + $0x78] sm:$0xff] }
 0x101   : > { %v1468_v6 = vpack.c.bf16 %v579_v0, %v578_v1  ;;  %v526_v7 = vadd.f32 %v1882_v43, %v525_v4  ;;  %v846_v1 = vld [vmem:[%s2094_s6 + $0x70] sm:$0xff]  ;;  %v749_v4 = vlaneseq }
 0x102   : > { %v581_v8 = vmax.f32 %v531_v3, 0.0  ;;  %v1555_v3 = vpack.c.bf16 %v847_v2, %v846_v1 }
 0x103   : > { %1466 = vmatpush3.bf16.xpose.msra.mxu0 %v1465_v62  ;;  %1493 = vmatpush3.bf16.msra.mxu1 %v1468_v6  ;;  %v580_v9 = vmax.f32 %v526_v7, 0.0  ;;  %v1264_v11 = vpop.f32.mrb[8].mxu0  ;;  %v844_v62 = vld [vmem:[%s2094_s6 + $0x60] sm:$0xff] }
 0x104   : > { %1467 = vmatprep.subr.bf16.mxu0 %v1667_v5  ;;  %1494 = vmatprep.subr.bf16.mxu1 %v1667_v5  ;;  %v541_v12 = vadd.f32 %v1264_v11, %v1882_v43  ;;  %v535_v13 = vpop.f32.mrb[9].mxu0  ;;  %v1552_v0 = vpack.c.bf16 %v845_v63, %v844_v62 }
 0x105   : > { %v1471_v14 = vpack.c.bf16 %v581_v8, %v580_v9  ;;  %v536_v15 = vadd.f32 %v1882_v43, %v535_v13 }
 0x106   : > { %v583_v16 = vmax.f32 %v541_v12, 0.0 }
 0x107   : > { %1496 = vmatpush3.bf16.msra.mxu1 %v1471_v14  ;;  %v582_v17 = vmax.f32 %v536_v15, 0.0  ;;  %v1267_v18 = vpop.f32.mrb[10].mxu0 }
 0x108   : > { %1497 = vmatprep.subr.bf16.mxu1 %v1667_v5  ;;  %v551_v19 = vadd.f32 %v1267_v18, %v1882_v43  ;;  %v545_v20 = vpop.f32.mrb[11].mxu0  ;;  %v848_v18 = vld [vmem:[%s2095_s7] sm:$0xff] }
 0x109   : > { %v1474_v21 = vpack.c.bf16 %v583_v16, %v582_v17  ;;  %v546_v22 = vadd.f32 %v1882_v43, %v545_v20 }
 0x10a   : > { %v585_v23 = vmax.f32 %v551_v19, 0.0  ;;  %v849_v19 = vld [vmem:[%s2095_s7 + $0x8] sm:$0xff] }
 0x10b   : > { %1469 = vmatpush3.bf16.xpose.msra.mxu0 %v1468_v6  ;;  %1499 = vmatpush3.bf16.msra.mxu1 %v1474_v21  ;;  %v584_v24 = vmax.f32 %v546_v22, 0.0  ;;  %v1270_v25 = vpop.f32.mrb[12].mxu0  ;;  %v750_v6 = vand.u32 127, %v749_v4 }
 0x10c   : > { %1470 = vmatprep.subr.bf16.mxu0 %v1667_v5  ;;  %1500 = vmatprep.subr.bf16.mxu1 %v1667_v5  ;;  %v561_v26 = vadd.f32 %v1270_v25, %v1882_v43  ;;  %v555_v27 = vpop.f32.mrb[13].mxu0 }
 0x10d   : > { %v1477_v28 = vpack.c.bf16 %v585_v23, %v584_v24  ;;  %v556_v30 = vadd.f32 %v1882_v43, %v555_v27  ;;  %vm751_vm2 = vcmp.lt.s32.totalorder %v750_v6, 16  ;;  %v850_v23 = vld [vmem:[%s2095_s7 + $0x10] sm:$0xff]  ;;  %v851_v24 = vld [vmem:[%s2095_s7 + $0x18] sm:$0xff]  ;;  %v853_v27 = vld [vmem:[%s2095_s7 + $0x28] sm:$0xff] }
 0x10e   : > { %v587_v31 = vmax.f32 %v561_v26, 0.0  ;;  %v1513_v25 = vpack.c.bf16 %v851_v24, %v850_v23  ;;  %v852_v26 = vld [vmem:[%s2095_s7 + $0x20] sm:$0xff] }
 0x10f   : > { %1502 = vmatpush3.bf16.msra.mxu1 %v1477_v28  ;;  %v586_v32 = vmax.f32 %v556_v30, 0.0  ;;  %v1273_v33 = vpop.f32.mrb[14].mxu0  ;;  %v854_v30 = vld [vmem:[%s2095_s7 + $0x30] sm:$0xff] }
 0x110   : > { %1503 = vmatprep.subr.bf16.mxu1 %v1667_v5  ;;  %v571_v34 = vadd.f32 %v1273_v33, %v1882_v43  ;;  %v565_v35 = vpop.f32.mrb[15].mxu0  ;;  %v857_v33 = vld [vmem:[%s2095_s7 + $0x48] sm:$0xff] }
 0x111   : > { %v1480_v36 = vpack.c.bf16 %v587_v31, %v586_v32  ;;  %v566_v37 = vadd.f32 %v1882_v43, %v565_v35  ;;  %v832_v43 = vld [vmem:[%s2094_s6] sm:$0xff]  ;;  %v858_v35 = vld [vmem:[%s2095_s7 + $0x50] sm:$0xff] }
 0x112   : > { %v589_v38 = vmax.f32 %v571_v34, 0.0  ;;  %v1534_v46 = vpack.c.bf16 %v833_v44, %v832_v43  ;;  %v856_v32 = vld [vmem:[%s2095_s7 + $0x40] sm:$0xff]  ;;  %v1531_v43 = vpack.c.bf16 %v863_v42, %v862_v41 }
 0x113   : > { %1472 = vmatpush3.bf16.xpose.msra.mxu0 %v1471_v14  ;;  %1505 = vmatpush3.bf16.msra.mxu1 %v1480_v36  ;;  %v588_v39 = vmax.f32 %v566_v37, 0.0  ;;  %v1522_v34 = vpack.c.bf16 %v857_v33, %v856_v32 }
 0x114   : > { %1473 = vmatprep.subr.bf16.mxu0 %v1667_v5  ;;  %1506 = vmatprep.subr.bf16.mxu1 %v1667_v5 }
 0x115   : > { %v1483_v40 = vpack.c.bf16 %v589_v38, %v588_v39  ;;  %v860_v38 = vld [vmem:[%s2095_s7 + $0x60] sm:$0xff]  ;;  %v861_v39 = vld [vmem:[%s2095_s7 + $0x68] sm:$0xff] }
 0x117   : > { %1508 = vmatpush3.bf16.msra.mxu1 %v1483_v40 }
 0x118   : > { %1509 = vmatprep.subr.bf16.mxu1 %v1667_v5 }
 0x11b   : > { %1475 = vmatpush3.bf16.xpose.msra.mxu0 %v1474_v21  ;;  %v1510_v21 = vpack.c.bf16 %v849_v19, %v848_v18 }
 0x11c   : > { %1476 = vmatprep.subr.bf16.mxu0 %v1667_v5 }
 0x123   : > { %1478 = vmatpush3.bf16.xpose.msra.mxu0 %v1477_v28  ;;  %v1516_v28 = vpack.c.bf16 %v853_v27, %v852_v26 }
 0x124   : > { %1479 = vmatprep.subr.bf16.mxu0 %v1667_v5 }
 0x12b   : > { %1481 = vmatpush3.bf16.xpose.msra.mxu0 %v1480_v36  ;;  %v859_v36 = vld [vmem:[%s2095_s7 + $0x58] sm:$0xff] }
 0x12c   : > { %1482 = vmatprep.subr.bf16.mxu0 %v1667_v5  ;;  %v1525_v37 = vpack.c.bf16 %v859_v36, %v858_v35 }
 0x133   : > { %1484 = vmatpush3.bf16.xpose.msra.mxu0 %v1483_v40  ;;  %v1528_v40 = vpack.c.bf16 %v861_v39, %v860_v38 }
 0x134   : > { %1533 = vmatprep.subr.bf16.mxu0 %v1667_v5 }
 0x13a   : > { %1326 = vmatmul.mubr.f32.vlgmr.msra.gmra.mrb[16].mxu0 %v678_v45 }
 0x13b   : > { %1535 = vmatpush3.bf16.msra.mxu0 %v1534_v46  ;;  %1430 = vmatprep.mubr.msk.f32.mxu0 %vm1668_vm0, %v1669_v10 }
 0x13c   : > { %1536 = vmatprep.subr.bf16.mxu0 %v1667_v5 }
 0x13f   : > { %1538 = vmatpush3.bf16.msra.mxu0 %v1537_v49 }
 0x140   : > { %1539 = vmatprep.subr.bf16.mxu0 %v1667_v5 }
 0x143   : > { %1541 = vmatpush3.bf16.msra.mxu0 %v1540_v52 }
 0x144   : > { %1542 = vmatprep.subr.bf16.mxu0 %v1667_v5 }
 0x147   : > { %1544 = vmatpush3.bf16.msra.mxu0 %v1543_v55 }
 0x148   : > { %1545 = vmatprep.subr.bf16.mxu0 %v1667_v5 }
 0x14b   : > { %1547 = vmatpush3.bf16.msra.mxu0 %v1546_v58 }
 0x14c   : > { %1548 = vmatprep.subr.bf16.mxu0 %v1667_v5 }
 0x14f   : > { %1550 = vmatpush3.bf16.msra.mxu0 %v1549_v61 }
 0x150   : > { %1551 = vmatprep.subr.bf16.mxu0 %v1667_v5 }
 0x153   : > { %1553 = vmatpush3.bf16.msra.mxu0 %v1552_v0 }
 0x154   : > { %1554 = vmatprep.subr.bf16.mxu0 %v1667_v5 }
 0x157   : > { %1556 = vmatpush3.bf16.msra.mxu0 %v1555_v3 }
 0x15a   : > { %1431 = vmatmul.mubr.f32.vlgmr.msra.gmra.mrb[18].mxu0 %v678_v45 }
 0x20d   : > { %v745_v7 = vpop.f32.mrb[16].mxu0 }
 0x20e   : > { %v1327_v8 = vpop.f32.mrb[17].mxu0  ;;  %v752_v9 = vsel %vm751_vm2, %v745_v7, -1e+30 }
 0x20f   : > { %753 = vmax.xlane.f32.xlu0 %v752_v9 }
 0x22d   : > { %v1000_v11 = vpop.f32.mrb[18].mxu0 }
 0x22e   : > { %v1432_v12 = vpop.f32.mrb[19].mxu0 }
 0x29c   : > { %v754_v13 = vpop.xlane.xlu0 %753 }
 0x29d   : > { %v755_v14 = vsub.f32 %v752_v9, %v754_v13 }
 0x29f   : > { %v756_v15 = vmul.f32 1.442695, %v755_v14 }
 0x2a1   : > { %1599 = vpow2.f32 %v756_v15 }
 0x2ab   : > { %v1600_v16 = vpop.eup %1599 }
 0x2ac   : > { %758 = vadd.xlane.f32.xlu0 %v1600_v16 }
 0x339   : > { %v759_v17 = vpop.xlane.xlu0 %758 }
 0x33a   : > { %1601 = vrcp.f32 %v759_v17 }
 0x344   : > { %v1602_v20 = vpop.eup %1601 }
 0x345   : > { %v761_v22 = vmul.f32 %v1602_v20, %v1600_v16 }
 0x347   : > { %1361 = vmatmul.mubr.f32.vlgmr.msra.gmra.mrb[2].mxu1 %v761_v22 }
 0x348   : > { %1511 = vmatpush3.bf16.msra.mxu1 %v1510_v21  ;;  %1395 = vmatprep.mubr.msk.f32.mxu1 %vm1668_vm0, %v1669_v10  ;;  %v855_v10 = vld [vmem:[%s2095_s7 + $0x38] sm:$0xff] }
 0x349   : > { %1512 = vmatprep.subr.bf16.mxu1 %v1667_v5  ;;  %v1519_v31 = vpack.c.bf16 %v855_v10, %v854_v30 }
 0x34c   : > { %1514 = vmatpush3.bf16.msra.mxu1 %v1513_v25 }
 0x34d   : > { %1515 = vmatprep.subr.bf16.mxu1 %v1667_v5 }
 0x350   : > { %1517 = vmatpush3.bf16.msra.mxu1 %v1516_v28 }
 0x351   : > { %1518 = vmatprep.subr.bf16.mxu1 %v1667_v5 }
 0x354   : > { %1520 = vmatpush3.bf16.msra.mxu1 %v1519_v31 }
 0x355   : > { %1521 = vmatprep.subr.bf16.mxu1 %v1667_v5 }
 0x358   : > { %1523 = vmatpush3.bf16.msra.mxu1 %v1522_v34 }
 0x359   : > { %1524 = vmatprep.subr.bf16.mxu1 %v1667_v5 }
 0x35c   : > { %1526 = vmatpush3.bf16.msra.mxu1 %v1525_v37 }
 0x35d   : > { %1527 = vmatprep.subr.bf16.mxu1 %v1667_v5 }
 0x360   : > { %1529 = vmatpush3.bf16.msra.mxu1 %v1528_v40 }
 0x361   : > { %1530 = vmatprep.subr.bf16.mxu1 %v1667_v5 }
 0x364   : > { %1532 = vmatpush3.bf16.msra.mxu1 %v1531_v43 }
 0x41a   : > { %v828_v44 = vpop.f32.mrb[2].mxu1 }
 0x41b   : > { %v1362_v45 = vpop.f32.mrb[3].mxu1  ;;  %1396 = vmatmul.mubr.f32.vlgmr.msra.gmra.mrb[4].mxu1 %v828_v44 }
 0x4ee   : > { %v930_v46 = vpop.f32.mrb[4].mxu1 }
 0x4ef   : > { %v1001_v48 = vadd.f32 %v1000_v11, %v930_v46  ;;  %v1397_v49 = vpop.f32.mrb[5].mxu1 }
 0x4f1   : > { %v1011_v50 = vadd.f32 %v1127_v47, %v1001_v48 }
 0x4f3   : > { %v1012_v51 = vmax.f32 %v1011_v50, 0.0 }
 0x4f5   : > { %v1013_v5 = vadd.f32 %v1012_v51, %v1842_v29 }
 0x4f7   : > { %1014 = vst.msk [vmem:[%s338_s29] sm:$0xff] %vm380_vm1, %v1013_v5 }
 0x4f8   : > { %1616 = shalt.err (!%p1613_p3)
}
 0x4f9   : > { %s1617_s25 = scalar_lea.hbm %s2045_s17, 128  ;;  %s1621_s29 = scalar_lea.hbm %s2097_s9, 256 }
 0x4fa   : > { %p1618_p4 = scmp.ne.s32.totalorder %s2045_s17, %s1617_s25  ;;  %p1622_p9 = scmp.lt.u32.totalorder %s2045_s17, %s2097_s9 }
 0x4fb   : > { %p1623_p10 = scmp.lt.u32.totalorder %s1621_s29, %s1617_s25  ;;  %p1625_p12 = scmp.lt.u32.totalorder %s1617_s25, %s2045_s17 }
 0x4fc   : > { %p1619_p7 = pnand %p1618_p4, %p1759_p5 }
 0x4fd   : > { %p1624_p11 = por %p1623_p10, %p1622_p9 }
 0x4fe   : > { %p1620_p8 = pneg %p1619_p7 }
 0x4ff   : > { %p1626_p13 = por %p1625_p12, %p1624_p11 }
 0x501   : > { %p1627_p0 = pnand %p1626_p13, %p1620_p8 }
 0x503   : > { %1630 = shalt.err (!%p1627_p0)
}
 0x504   : > { %1557 = dma.vmem_to_hbm [thread:$0]  (%p1759_p5), %s2047_s22, 128, %s2045_s17, %s1016_s23  }
 0x505 PF: > { %p1563_p1 = scmp.ge.s32.totalorder %s1665_s12, 2  ;;  %s1041_s24 = sand.u32 1, %s1653_s30  }
 0x506   : > { %s1042_s13 = scalar_lea.sflag [#allocation3], %s1041_s24 }
 0x507   : > { %p1560_p2 = pnand %p1563_p1, %p1763_p6 }
 0x509   : > { %1648 = dma.done.wait (!%p1560_p2), %s1042_s13, 128  }
 0x50a   : > { %1650 = vsyncadd (!%p1560_p2), %s1042_s13, 4294967168  ;;  %p19_p3 = scmp.ge.s32.totalorder %s1746_s15, 4   ;;  %s2100_s30 = smov %s1657_s10 }
 0x50b   : > { %s2101_s10 = smov %s1661_s11  ;;  %s2102_s11 = smov %s1757_s18 }
 0x50c   : > { %s2103_s12 = smov %s1746_s15  ;;  %21 = sbr.rel (!%p19_p3) target bundleno = 3 (0x3), region = 94 }
 0x513   :  { %1047 = vsyncpa [#allocation3], 1 }
 0x514   :  { %1049 = vsyncpa [#allocation3 + $0x1], 1 }

</bundles_post_ra>
